<compile_context>
chip_gen: v5e
topology: v5e:2x2
jax: 0.10.0
libtpu: 0.0.40
codegen_flags: <defaults>
</compile_context>

<pallas_src>
import numpy as np
import jax
import jax.numpy as jnp
from jax.experimental import pallas as pl
from jax.experimental.pallas import tpu as pltpu


def _round_up(x, m):
    return (x + m - 1) // m * m


def _make_kernel(Cin, Cout, S, Wp, LCHUNK, HALO):
    K = 3

    def kernel(xa_ref, xb_ref, w_ref, b_ref, a_ref, o_ref, win_ref, col_ref):
        # xa_ref: (1, Cin, LCHUNK) bf16  main lane chunk
        # xb_ref: (1, Cin, HALO)   bf16  halo (next lanes of the same array)
        # w_ref : (Cout, 27*Cin)   bf16  tap-major weights
        # b_ref : (Cout, 1)        f32   bias (VMEM column)
        # a_ref : (1,)             f32   PReLU slope (SMEM)
        # o_ref : (1, Cout, LCHUNK)
        # win_ref: (Cin, LCHUNK+HALO) bf16 VMEM scratch (contiguous window)
        # col_ref: (27*Cin, LCHUNK)   bf16 VMEM scratch (im2col)

        # Assemble the contiguous lane window for this chunk.
        win_ref[:, :LCHUNK] = xa_ref[0]
        win_ref[:, LCHUNK:] = xb_ref[0]

        # im2col: one lane-shifted slab per tap, sublane-stacked tap-major.
        # TODO(synk): if vld/XLU ever binds, share one slab per (kd,kh) and
        # derive kw=1,2 via pltpu.roll instead of 3 independent shifted reads.
        for kd in range(K):
            for kh in range(K):
                for kw in range(K):
                    t = (kd * K + kh) * K + kw
                    off = kd * S + kh * Wp + kw          # static lane shift
                    col_ref[t * Cin:(t + 1) * Cin, :] = \
                        win_ref[:, off:off + LCHUNK]

        # Single fused MXU matmul over all 27 taps (K = 27*Cin), f32 accumulate.
        acc = jnp.dot(w_ref[...], col_ref[...],
                      preferred_element_type=jnp.float32)   # (Cout, LCHUNK)

        # Vectorized epilogue: bias column broadcast + PReLU + one dense store.
        out = acc + b_ref[...]
        alpha = a_ref[0]
        out = jnp.where(out >= 0.0, out, alpha * out)
        o_ref[0, :, :] = out.astype(o_ref.dtype)

    return kernel


def block2d_forward(x, w, b, a):
    """x: (B, Cin, D, H, W); w: (Cout, Cin, 3, 3, 3); b: (Cout,); a: scalar.
    Returns PReLU(Conv3d(stride=1, padding=(0,1,1))(x)): (B, Cout, D-2, H, W)."""
    B, Cin, D, H, W = x.shape
    Cout = w.shape[0]
    Hp, Wp = H + 2, W + 2
    S = Hp * Wp
    Dout = D - 2
    Lout = Dout * S
    max_off = 2 * S + 2 * Wp + 2                 # largest tap lane shift
    HALO = _round_up(max_off, 128)               # halo block width (lanes)

    # Pick the lane-chunk size: a multiple of HALO (so the halo BlockSpec index
    # is exact) minimizing computed lanes; prefer smaller chunks on ties to
    # bound live vregs / scratch.
    best = None
    for m in range(1, 9):
        lchunk = m * HALO
        if 27 * Cin * lchunk * 2 > (8 << 20) and best is not None:
            break                                # cap im2col scratch ~8 MiB
        nc = -(-Lout // lchunk)
        total = nc * lchunk
        if best is None or total < best[1]:
            best = (lchunk, total, nc)
        if lchunk >= Lout:
            break
    LCHUNK, _, NC = best
    R = LCHUNK // HALO
    Ltot = (NC + 1) * LCHUNK                     # padded flattened input lanes
    # TODO(synk): for very large H*W (HALO itself many-MiB) switch to row-level
    # chunking instead of plane-level; not needed at these shapes.

    # Host glue: zero-pad H/W, flatten (D, Hp, Wp) onto lanes, pad the tail,
    # cast operands to bf16 (f32 accumulation happens on the MXU).
    xp = jnp.pad(x, ((0, 0), (0, 0), (0, 0), (1, 1), (1, 1)))
    xf = xp.reshape(B, Cin, D * S)
    xf = jnp.pad(xf, ((0, 0), (0, 0), (0, Ltot - D * S))).astype(jnp.bfloat16)

    # Weights: (Cout, Cin, 3,3,3) -> (Cout, 27*Cin), tap-major; bf16.
    wf = jnp.transpose(w, (0, 2, 3, 4, 1)).reshape(Cout, 27 * Cin)
    wf = wf.astype(jnp.bfloat16)
    bf = b.astype(jnp.float32).reshape(Cout, 1)
    af = jnp.asarray(a, jnp.float32).reshape(1)

    out_bpe = jnp.dtype(x.dtype).itemsize
    need = (2 * (Cin * LCHUNK * 2 + Cin * HALO * 2        # x chunk + halo (dbl buf)
                 + Cout * 27 * Cin * 2 + Cout * 4         # weights + bias
                 + Cout * LCHUNK * out_bpe)                # output block
            + Cin * (LCHUNK + HALO) * 2                    # window scratch
            + 27 * Cin * LCHUNK * 2)                       # im2col scratch
    vmem_limit = min(max(2 * int(need) + (8 << 20), 16 << 20), 100 << 20)

    kernel = _make_kernel(Cin, Cout, S, Wp, LCHUNK, HALO)

    out = pl.pallas_call(
        kernel,
        out_shape=jax.ShapeDtypeStruct((B, Cout, NC * LCHUNK), x.dtype),
        grid=(B, NC),
        in_specs=[
            pl.BlockSpec((1, Cin, LCHUNK), lambda n, c: (n, 0, c)),
            pl.BlockSpec((1, Cin, HALO), lambda n, c: (n, 0, (c + 1) * R)),
            pl.BlockSpec((Cout, 27 * Cin), lambda n, c: (0, 0)),
            pl.BlockSpec((Cout, 1), lambda n, c: (0, 0)),
            pl.BlockSpec(memory_space=pltpu.MemorySpace.SMEM),
        ],
        out_specs=pl.BlockSpec((1, Cout, LCHUNK), lambda n, c: (n, 0, c)),
        scratch_shapes=[
            pltpu.VMEM((Cin, LCHUNK + HALO), jnp.bfloat16),
            pltpu.VMEM((27 * Cin, LCHUNK), jnp.bfloat16),
        ],
        compiler_params=pltpu.CompilerParams(
            dimension_semantics=("parallel", "parallel"),
            vmem_limit_bytes=vmem_limit),
    )(xf, xf, wf, bf, af)
    # TODO(synk): when Cout < 8 (tiny n_feats) half the output sublanes are
    # idle; packing two batch elements per grid step would fill them.

    # Epilogue: drop chunk round-up tail + padded rows/cols, back to NCDHW.
    y = out[:, :, :Lout].reshape(B, Cout, Dout, Hp, Wp)[:, :, :, :H, :W]
    return y


# ---------------------------- pure-JAX reference ------------------------------

def block2d_reference(x, w, b, a):
    y = jax.lax.conv_general_dilated(
        x, w, window_strides=(1, 1, 1),
        padding=((0, 0), (1, 1), (1, 1)),
        dimension_numbers=("NCDHW", "OIDHW", "NCDHW"),
        precision=jax.lax.Precision.HIGHEST)
    y = y + b.reshape(1, -1, 1, 1, 1)
    return jnp.where(y >= 0.0, y, a * y)


if __name__ == "__main__":
    key = jax.random.PRNGKey(0)
    kx, kwt, kbs = jax.random.split(key, 3)

    # small shapes consistent with the module: (batch, n_feats, D, H, W)
    B, C, D, H, W = 2, 8, 8, 16, 16
    Cout = C // 2
    x = jax.random.normal(kx, (B, C, D, H, W), jnp.float32)
    w = 0.1 * jax.random.normal(kwt, (Cout, C, 3, 3, 3), jnp.float32)
    b = 0.05 * jax.random.normal(kbs, (Cout,), jnp.float32)
    a = jnp.float32(0.25)   # nn.PReLU() default init

    fwd = jax.jit(block2d_forward)
    y = jax.block_until_ready(fwd(x, w, b, a))
    assert y.shape == (B, Cout, D - 2, H, W), y.shape

    # Tight check vs a reference fed the same bf16-quantized operands
    # (kernel accumulates in f32; only operand quantization differs).
    xq = x.astype(jnp.bfloat16).astype(jnp.float32)
    wq = w.astype(jnp.bfloat16).astype(jnp.float32)
    y_ref_q = block2d_reference(xq, wq, b, a)
    np.testing.assert_allclose(np.asarray(y), np.asarray(y_ref_q),
                               rtol=2e-3, atol=2e-3)

    # Loose sanity check vs the full-f32 reference (bf16 operand rounding).
    y_ref = block2d_reference(x, w, b, a)
    np.testing.assert_allclose(np.asarray(y), np.asarray(y_ref),
                               rtol=1e-1, atol=1e-1)

    print("KERNEL_OK")
</pallas_src>

<mosaic_0001>
module attributes {stable_mosaic.version = 11 : i64} {
  func.func @kernel(%arg0: i32, %arg1: i32, %arg2: memref<1x8x768xbf16, #tpu.memory_space<vmem>>, %arg3: memref<1x8x768xbf16, #tpu.memory_space<vmem>>, %arg4: memref<4x216xbf16, #tpu.memory_space<vmem>>, %arg5: memref<4x1xf32, #tpu.memory_space<vmem>>, %arg6: memref<1xf32, #tpu.memory_space<smem>>, %arg7: memref<1x4x768xf32, #tpu.memory_space<vmem>>, %arg8: memref<8x1536xbf16, #tpu.memory_space<vmem>>, %arg9: memref<216x768xbf16, #tpu.memory_space<vmem>>) attributes {dimension_semantics = [#tpu.dimension_semantics<parallel>, #tpu.dimension_semantics<parallel>], iteration_bounds = array<i64: 2, 3>, scalar_prefetch = 0 : i64, scratch_operands = 2 : i64, tpu.core_type = #tpu.core_type<tc>, window_params = [{transform_indices = @transform_0, window_bounds = array<i64: 1, 8, 768>}, {transform_indices = @transform_1, window_bounds = array<i64: 1, 8, 768>}, {pipeline_mode = #tpu.pipeline_mode<synchronous>, transform_indices = @transform_2, window_bounds = array<i64: 4, 216>}, {pipeline_mode = #tpu.pipeline_mode<synchronous>, transform_indices = @transform_3, window_bounds = array<i64: 4, 1>}, {transform_indices = @transform_4, window_bounds = array<i64: 1>}, {transform_indices = @transform_5, window_bounds = array<i64: 1, 4, 768>}]} {
    %c0 = arith.constant 0 : index
    %c0_0 = arith.constant 0 : index
    %c0_1 = arith.constant 0 : index
    %0 = vector.load %arg2[%c0, %c0_0, %c0_1] : memref<1x8x768xbf16, #tpu.memory_space<vmem>>, vector<1x8x768xbf16>
    %1 = vector.shape_cast %0 : vector<1x8x768xbf16> to vector<8x768xbf16>
    %c0_2 = arith.constant 0 : index
    %c0_3 = arith.constant 0 : index
    %2 = vector.load %arg8[%c0_2, %c0_3] : memref<8x1536xbf16, #tpu.memory_space<vmem>>, vector<8x768xbf16>
    tpu.vector_store %arg8[%c0_2, %c0_3], %1 {strides = array<i32>} : memref<8x1536xbf16, #tpu.memory_space<vmem>>, vector<8x768xbf16>,
    %c0_4 = arith.constant 0 : index
    %c0_5 = arith.constant 0 : index
    %c0_6 = arith.constant 0 : index
    %3 = vector.load %arg3[%c0_4, %c0_5, %c0_6] : memref<1x8x768xbf16, #tpu.memory_space<vmem>>, vector<1x8x768xbf16>
    %4 = vector.shape_cast %3 : vector<1x8x768xbf16> to vector<8x768xbf16>
    %c0_7 = arith.constant 0 : index
    %c768 = arith.constant 768 : index
    %5 = vector.load %arg8[%c0_7, %c768] : memref<8x1536xbf16, #tpu.memory_space<vmem>>, vector<8x768xbf16>
    tpu.vector_store %arg8[%c0_7, %c768], %4 {strides = array<i32>} : memref<8x1536xbf16, #tpu.memory_space<vmem>>, vector<8x768xbf16>,
    %c0_8 = arith.constant 0 : index
    %c0_9 = arith.constant 0 : index
    %6 = vector.load %arg8[%c0_8, %c0_9] : memref<8x1536xbf16, #tpu.memory_space<vmem>>, vector<8x768xbf16>
    %c0_10 = arith.constant 0 : index
    %c0_11 = arith.constant 0 : index
    %7 = vector.load %arg9[%c0_10, %c0_11] : memref<216x768xbf16, #tpu.memory_space<vmem>>, vector<8x768xbf16>
    tpu.vector_store %arg9[%c0_10, %c0_11], %6 {strides = array<i32>} : memref<216x768xbf16, #tpu.memory_space<vmem>>, vector<8x768xbf16>,
    %c0_12 = arith.constant 0 : index
    %c1 = arith.constant 1 : index
    %8 = vector.load %arg8[%c0_12, %c1] : memref<8x1536xbf16, #tpu.memory_space<vmem>>, vector<8x768xbf16>
    %c8 = arith.constant 8 : index
    %c0_13 = arith.constant 0 : index
    %9 = vector.load %arg9[%c8, %c0_13] : memref<216x768xbf16, #tpu.memory_space<vmem>>, vector<8x768xbf16>
    tpu.vector_store %arg9[%c8, %c0_13], %8 {strides = array<i32>} : memref<216x768xbf16, #tpu.memory_space<vmem>>, vector<8x768xbf16>,
    %c0_14 = arith.constant 0 : index
    %c2 = arith.constant 2 : index
    %10 = vector.load %arg8[%c0_14, %c2] : memref<8x1536xbf16, #tpu.memory_space<vmem>>, vector<8x768xbf16>
    %c16 = arith.constant 16 : index
    %c0_15 = arith.constant 0 : index
    %11 = vector.load %arg9[%c16, %c0_15] : memref<216x768xbf16, #tpu.memory_space<vmem>>, vector<8x768xbf16>
    tpu.vector_store %arg9[%c16, %c0_15], %10 {strides = array<i32>} : memref<216x768xbf16, #tpu.memory_space<vmem>>, vector<8x768xbf16>,
    %c0_16 = arith.constant 0 : index
    %c18 = arith.constant 18 : index
    %12 = vector.load %arg8[%c0_16, %c18] : memref<8x1536xbf16, #tpu.memory_space<vmem>>, vector<8x768xbf16>
    %c24 = arith.constant 24 : index
    %c0_17 = arith.constant 0 : index
    %13 = vector.load %arg9[%c24, %c0_17] : memref<216x768xbf16, #tpu.memory_space<vmem>>, vector<8x768xbf16>
    tpu.vector_store %arg9[%c24, %c0_17], %12 {strides = array<i32>} : memref<216x768xbf16, #tpu.memory_space<vmem>>, vector<8x768xbf16>,
    %c0_18 = arith.constant 0 : index
    %c19 = arith.constant 19 : index
    %14 = vector.load %arg8[%c0_18, %c19] : memref<8x1536xbf16, #tpu.memory_space<vmem>>, vector<8x768xbf16>
    %c32 = arith.constant 32 : index
    %c0_19 = arith.constant 0 : index
    %15 = vector.load %arg9[%c32, %c0_19] : memref<216x768xbf16, #tpu.memory_space<vmem>>, vector<8x768xbf16>
    tpu.vector_store %arg9[%c32, %c0_19], %14 {strides = array<i32>} : memref<216x768xbf16, #tpu.memory_space<vmem>>, vector<8x768xbf16>,
    %c0_20 = arith.constant 0 : index
    %c20 = arith.constant 20 : index
    %16 = vector.load %arg8[%c0_20, %c20] : memref<8x1536xbf16, #tpu.memory_space<vmem>>, vector<8x768xbf16>
    %c40 = arith.constant 40 : index
    %c0_21 = arith.constant 0 : index
    %17 = vector.load %arg9[%c40, %c0_21] : memref<216x768xbf16, #tpu.memory_space<vmem>>, vector<8x768xbf16>
    tpu.vector_store %arg9[%c40, %c0_21], %16 {strides = array<i32>} : memref<216x768xbf16, #tpu.memory_space<vmem>>, vector<8x768xbf16>,
    %c0_22 = arith.constant 0 : index
    %c36 = arith.constant 36 : index
    %18 = vector.load %arg8[%c0_22, %c36] : memref<8x1536xbf16, #tpu.memory_space<vmem>>, vector<8x768xbf16>
    %c48 = arith.constant 48 : index
    %c0_23 = arith.constant 0 : index
    %19 = vector.load %arg9[%c48, %c0_23] : memref<216x768xbf16, #tpu.memory_space<vmem>>, vector<8x768xbf16>
    tpu.vector_store %arg9[%c48, %c0_23], %18 {strides = array<i32>} : memref<216x768xbf16, #tpu.memory_space<vmem>>, vector<8x768xbf16>,
    %c0_24 = arith.constant 0 : index
    %c37 = arith.constant 37 : index
    %20 = vector.load %arg8[%c0_24, %c37] : memref<8x1536xbf16, #tpu.memory_space<vmem>>, vector<8x768xbf16>
    %c56 = arith.constant 56 : index
    %c0_25 = arith.constant 0 : index
    %21 = vector.load %arg9[%c56, %c0_25] : memref<216x768xbf16, #tpu.memory_space<vmem>>, vector<8x768xbf16>
    tpu.vector_store %arg9[%c56, %c0_25], %20 {strides = array<i32>} : memref<216x768xbf16, #tpu.memory_space<vmem>>, vector<8x768xbf16>,
    %c0_26 = arith.constant 0 : index
    %c38 = arith.constant 38 : index
    %22 = vector.load %arg8[%c0_26, %c38] : memref<8x1536xbf16, #tpu.memory_space<vmem>>, vector<8x768xbf16>
    %c64 = arith.constant 64 : index
    %c0_27 = arith.constant 0 : index
    %23 = vector.load %arg9[%c64, %c0_27] : memref<216x768xbf16, #tpu.memory_space<vmem>>, vector<8x768xbf16>
    tpu.vector_store %arg9[%c64, %c0_27], %22 {strides = array<i32>} : memref<216x768xbf16, #tpu.memory_space<vmem>>, vector<8x768xbf16>,
    %c0_28 = arith.constant 0 : index
    %c324 = arith.constant 324 : index
    %24 = vector.load %arg8[%c0_28, %c324] : memref<8x1536xbf16, #tpu.memory_space<vmem>>, vector<8x768xbf16>
    %c72 = arith.constant 72 : index
    %c0_29 = arith.constant 0 : index
    %25 = vector.load %arg9[%c72, %c0_29] : memref<216x768xbf16, #tpu.memory_space<vmem>>, vector<8x768xbf16>
    tpu.vector_store %arg9[%c72, %c0_29], %24 {strides = array<i32>} : memref<216x768xbf16, #tpu.memory_space<vmem>>, vector<8x768xbf16>,
    %c0_30 = arith.constant 0 : index
    %c325 = arith.constant 325 : index
    %26 = vector.load %arg8[%c0_30, %c325] : memref<8x1536xbf16, #tpu.memory_space<vmem>>, vector<8x768xbf16>
    %c80 = arith.constant 80 : index
    %c0_31 = arith.constant 0 : index
    %27 = vector.load %arg9[%c80, %c0_31] : memref<216x768xbf16, #tpu.memory_space<vmem>>, vector<8x768xbf16>
    tpu.vector_store %arg9[%c80, %c0_31], %26 {strides = array<i32>} : memref<216x768xbf16, #tpu.memory_space<vmem>>, vector<8x768xbf16>,
    %c0_32 = arith.constant 0 : index
    %c326 = arith.constant 326 : index
    %28 = vector.load %arg8[%c0_32, %c326] : memref<8x1536xbf16, #tpu.memory_space<vmem>>, vector<8x768xbf16>
    %c88 = arith.constant 88 : index
    %c0_33 = arith.constant 0 : index
    %29 = vector.load %arg9[%c88, %c0_33] : memref<216x768xbf16, #tpu.memory_space<vmem>>, vector<8x768xbf16>
    tpu.vector_store %arg9[%c88, %c0_33], %28 {strides = array<i32>} : memref<216x768xbf16, #tpu.memory_space<vmem>>, vector<8x768xbf16>,
    %c0_34 = arith.constant 0 : index
    %c342 = arith.constant 342 : index
    %30 = vector.load %arg8[%c0_34, %c342] : memref<8x1536xbf16, #tpu.memory_space<vmem>>, vector<8x768xbf16>
    %c96 = arith.constant 96 : index
    %c0_35 = arith.constant 0 : index
    %31 = vector.load %arg9[%c96, %c0_35] : memref<216x768xbf16, #tpu.memory_space<vmem>>, vector<8x768xbf16>
    tpu.vector_store %arg9[%c96, %c0_35], %30 {strides = array<i32>} : memref<216x768xbf16, #tpu.memory_space<vmem>>, vector<8x768xbf16>,
    %c0_36 = arith.constant 0 : index
    %c343 = arith.constant 343 : index
    %32 = vector.load %arg8[%c0_36, %c343] : memref<8x1536xbf16, #tpu.memory_space<vmem>>, vector<8x768xbf16>
    %c104 = arith.constant 104 : index
    %c0_37 = arith.constant 0 : index
    %33 = vector.load %arg9[%c104, %c0_37] : memref<216x768xbf16, #tpu.memory_space<vmem>>, vector<8x768xbf16>
    tpu.vector_store %arg9[%c104, %c0_37], %32 {strides = array<i32>} : memref<216x768xbf16, #tpu.memory_space<vmem>>, vector<8x768xbf16>,
    %c0_38 = arith.constant 0 : index
    %c344 = arith.constant 344 : index
    %34 = vector.load %arg8[%c0_38, %c344] : memref<8x1536xbf16, #tpu.memory_space<vmem>>, vector<8x768xbf16>
    %c112 = arith.constant 112 : index
    %c0_39 = arith.constant 0 : index
    %35 = vector.load %arg9[%c112, %c0_39] : memref<216x768xbf16, #tpu.memory_space<vmem>>, vector<8x768xbf16>
    tpu.vector_store %arg9[%c112, %c0_39], %34 {strides = array<i32>} : memref<216x768xbf16, #tpu.memory_space<vmem>>, vector<8x768xbf16>,
    %c0_40 = arith.constant 0 : index
    %c360 = arith.constant 360 : index
    %36 = vector.load %arg8[%c0_40, %c360] : memref<8x1536xbf16, #tpu.memory_space<vmem>>, vector<8x768xbf16>
    %c120 = arith.constant 120 : index
    %c0_41 = arith.constant 0 : index
    %37 = vector.load %arg9[%c120, %c0_41] : memref<216x768xbf16, #tpu.memory_space<vmem>>, vector<8x768xbf16>
    tpu.vector_store %arg9[%c120, %c0_41], %36 {strides = array<i32>} : memref<216x768xbf16, #tpu.memory_space<vmem>>, vector<8x768xbf16>,
    %c0_42 = arith.constant 0 : index
    %c361 = arith.constant 361 : index
    %38 = vector.load %arg8[%c0_42, %c361] : memref<8x1536xbf16, #tpu.memory_space<vmem>>, vector<8x768xbf16>
    %c128 = arith.constant 128 : index
    %c0_43 = arith.constant 0 : index
    %39 = vector.load %arg9[%c128, %c0_43] : memref<216x768xbf16, #tpu.memory_space<vmem>>, vector<8x768xbf16>
    tpu.vector_store %arg9[%c128, %c0_43], %38 {strides = array<i32>} : memref<216x768xbf16, #tpu.memory_space<vmem>>, vector<8x768xbf16>,
    %c0_44 = arith.constant 0 : index
    %c362 = arith.constant 362 : index
    %40 = vector.load %arg8[%c0_44, %c362] : memref<8x1536xbf16, #tpu.memory_space<vmem>>, vector<8x768xbf16>
    %c136 = arith.constant 136 : index
    %c0_45 = arith.constant 0 : index
    %41 = vector.load %arg9[%c136, %c0_45] : memref<216x768xbf16, #tpu.memory_space<vmem>>, vector<8x768xbf16>
    tpu.vector_store %arg9[%c136, %c0_45], %40 {strides = array<i32>} : memref<216x768xbf16, #tpu.memory_space<vmem>>, vector<8x768xbf16>,
    %c0_46 = arith.constant 0 : index
    %c648 = arith.constant 648 : index
    %42 = vector.load %arg8[%c0_46, %c648] : memref<8x1536xbf16, #tpu.memory_space<vmem>>, vector<8x768xbf16>
    %c144 = arith.constant 144 : index
    %c0_47 = arith.constant 0 : index
    %43 = vector.load %arg9[%c144, %c0_47] : memref<216x768xbf16, #tpu.memory_space<vmem>>, vector<8x768xbf16>
    tpu.vector_store %arg9[%c144, %c0_47], %42 {strides = array<i32>} : memref<216x768xbf16, #tpu.memory_space<vmem>>, vector<8x768xbf16>,
    %c0_48 = arith.constant 0 : index
    %c649 = arith.constant 649 : index
    %44 = vector.load %arg8[%c0_48, %c649] : memref<8x1536xbf16, #tpu.memory_space<vmem>>, vector<8x768xbf16>
    %c152 = arith.constant 152 : index
    %c0_49 = arith.constant 0 : index
    %45 = vector.load %arg9[%c152, %c0_49] : memref<216x768xbf16, #tpu.memory_space<vmem>>, vector<8x768xbf16>
    tpu.vector_store %arg9[%c152, %c0_49], %44 {strides = array<i32>} : memref<216x768xbf16, #tpu.memory_space<vmem>>, vector<8x768xbf16>,
    %c0_50 = arith.constant 0 : index
    %c650 = arith.constant 650 : index
    %46 = vector.load %arg8[%c0_50, %c650] : memref<8x1536xbf16, #tpu.memory_space<vmem>>, vector<8x768xbf16>
    %c160 = arith.constant 160 : index
    %c0_51 = arith.constant 0 : index
    %47 = vector.load %arg9[%c160, %c0_51] : memref<216x768xbf16, #tpu.memory_space<vmem>>, vector<8x768xbf16>
    tpu.vector_store %arg9[%c160, %c0_51], %46 {strides = array<i32>} : memref<216x768xbf16, #tpu.memory_space<vmem>>, vector<8x768xbf16>,
    %c0_52 = arith.constant 0 : index
    %c666 = arith.constant 666 : index
    %48 = vector.load %arg8[%c0_52, %c666] : memref<8x1536xbf16, #tpu.memory_space<vmem>>, vector<8x768xbf16>
    %c168 = arith.constant 168 : index
    %c0_53 = arith.constant 0 : index
    %49 = vector.load %arg9[%c168, %c0_53] : memref<216x768xbf16, #tpu.memory_space<vmem>>, vector<8x768xbf16>
    tpu.vector_store %arg9[%c168, %c0_53], %48 {strides = array<i32>} : memref<216x768xbf16, #tpu.memory_space<vmem>>, vector<8x768xbf16>,
    %c0_54 = arith.constant 0 : index
    %c667 = arith.constant 667 : index
    %50 = vector.load %arg8[%c0_54, %c667] : memref<8x1536xbf16, #tpu.memory_space<vmem>>, vector<8x768xbf16>
    %c176 = arith.constant 176 : index
    %c0_55 = arith.constant 0 : index
    %51 = vector.load %arg9[%c176, %c0_55] : memref<216x768xbf16, #tpu.memory_space<vmem>>, vector<8x768xbf16>
    tpu.vector_store %arg9[%c176, %c0_55], %50 {strides = array<i32>} : memref<216x768xbf16, #tpu.memory_space<vmem>>, vector<8x768xbf16>,
    %c0_56 = arith.constant 0 : index
    %c668 = arith.constant 668 : index
    %52 = vector.load %arg8[%c0_56, %c668] : memref<8x1536xbf16, #tpu.memory_space<vmem>>, vector<8x768xbf16>
    %c184 = arith.constant 184 : index
    %c0_57 = arith.constant 0 : index
    %53 = vector.load %arg9[%c184, %c0_57] : memref<216x768xbf16, #tpu.memory_space<vmem>>, vector<8x768xbf16>
    tpu.vector_store %arg9[%c184, %c0_57], %52 {strides = array<i32>} : memref<216x768xbf16, #tpu.memory_space<vmem>>, vector<8x768xbf16>,
    %c0_58 = arith.constant 0 : index
    %c684 = arith.constant 684 : index
    %54 = vector.load %arg8[%c0_58, %c684] : memref<8x1536xbf16, #tpu.memory_space<vmem>>, vector<8x768xbf16>
    %c192 = arith.constant 192 : index
    %c0_59 = arith.constant 0 : index
    %55 = vector.load %arg9[%c192, %c0_59] : memref<216x768xbf16, #tpu.memory_space<vmem>>, vector<8x768xbf16>
    tpu.vector_store %arg9[%c192, %c0_59], %54 {strides = array<i32>} : memref<216x768xbf16, #tpu.memory_space<vmem>>, vector<8x768xbf16>,
    %c0_60 = arith.constant 0 : index
    %c685 = arith.constant 685 : index
    %56 = vector.load %arg8[%c0_60, %c685] : memref<8x1536xbf16, #tpu.memory_space<vmem>>, vector<8x768xbf16>
    %c200 = arith.constant 200 : index
    %c0_61 = arith.constant 0 : index
    %57 = vector.load %arg9[%c200, %c0_61] : memref<216x768xbf16, #tpu.memory_space<vmem>>, vector<8x768xbf16>
    tpu.vector_store %arg9[%c200, %c0_61], %56 {strides = array<i32>} : memref<216x768xbf16, #tpu.memory_space<vmem>>, vector<8x768xbf16>,
    %c0_62 = arith.constant 0 : index
    %c686 = arith.constant 686 : index
    %58 = vector.load %arg8[%c0_62, %c686] : memref<8x1536xbf16, #tpu.memory_space<vmem>>, vector<8x768xbf16>
    %c208 = arith.constant 208 : index
    %c0_63 = arith.constant 0 : index
    %59 = vector.load %arg9[%c208, %c0_63] : memref<216x768xbf16, #tpu.memory_space<vmem>>, vector<8x768xbf16>
    tpu.vector_store %arg9[%c208, %c0_63], %58 {strides = array<i32>} : memref<216x768xbf16, #tpu.memory_space<vmem>>, vector<8x768xbf16>,
    %c0_64 = arith.constant 0 : index
    %c0_65 = arith.constant 0 : index
    %60 = vector.load %arg4[%c0_64, %c0_65] : memref<4x216xbf16, #tpu.memory_space<vmem>>, vector<4x216xbf16>
    %c0_66 = arith.constant 0 : index
    %c0_67 = arith.constant 0 : index
    %61 = vector.load %arg9[%c0_66, %c0_67] : memref<216x768xbf16, #tpu.memory_space<vmem>>, vector<216x768xbf16>
    %cst = arith.constant dense<0.000000e+00> : vector<4x768xf32>
    %62 = tpu.matmul %60, %61, %cst {dimension_numbers = #tpu.dot_dimension_numbers<[1], [0], [0], [1], [0, 0, 1, 1], [], []>} : vector<4x216xbf16>, vector<216x768xbf16>, vector<4x768xf32> -> vector<4x768xf32>
    %c0_68 = arith.constant 0 : index
    %c0_69 = arith.constant 0 : index
    %63 = vector.load %arg5[%c0_68, %c0_69] : memref<4x1xf32, #tpu.memory_space<vmem>>, vector<4x1xf32>
    %64 = vector.broadcast %63 : vector<4x1xf32> to vector<4x768xf32>
    %65 = arith.addf %62, %64 : vector<4x768xf32>
    %c0_70 = arith.constant 0 : index
    %66 = memref.load %arg6[%c0_70] : memref<1xf32, #tpu.memory_space<smem>>
    %cst_71 = arith.constant 0.000000e+00 : f32
    %67 = vector.broadcast %cst_71 : f32 to vector<4x768xf32>
    %68 = arith.cmpf oge, %65, %67 : vector<4x768xf32>
    %69 = vector.broadcast %66 : f32 to vector<4x768xf32>
    %70 = arith.mulf %69, %65 : vector<4x768xf32>
    %71 = arith.select %68, %65, %70 : vector<4x768xi1>, vector<4x768xf32>
    %c0_72 = arith.constant 0 : index
    %c0_73 = arith.constant 0 : index
    %c0_74 = arith.constant 0 : index
    %72 = vector.load %arg7[%c0_72, %c0_73, %c0_74] : memref<1x4x768xf32, #tpu.memory_space<vmem>>, vector<1x4x768xf32>
    %73 = vector.shape_cast %72 : vector<1x4x768xf32> to vector<4x768xf32>
    %74 = vector.shape_cast %71 : vector<4x768xf32> to vector<1x4x768xf32>
    tpu.vector_store %arg7[%c0_72, %c0_73, %c0_74], %74 {strides = array<i32>} : memref<1x4x768xf32, #tpu.memory_space<vmem>>, vector<1x4x768xf32>,
    return
  }
  func.func @transform_0(%arg0: i32, %arg1: i32) -> (i32, i32, i32) {
    %c0_i32 = arith.constant 0 : i32
    %c0_i32_0 = arith.constant 0 : i32
    return %arg0, %c0_i32, %arg1 : i32, i32, i32
  }
  func.func @transform_1(%arg0: i32, %arg1: i32) -> (i32, i32, i32) {
    %c1_i32 = arith.constant 1 : i32
    %0 = arith.addi %arg1, %c1_i32 : i32
    %c1_i32_0 = arith.constant 1 : i32
    %1 = arith.muli %0, %c1_i32_0 : i32
    %c0_i32 = arith.constant 0 : i32
    %c0_i32_1 = arith.constant 0 : i32
    return %arg0, %c0_i32, %1 : i32, i32, i32
  }
  func.func @transform_2(%arg0: i32, %arg1: i32) -> (i32, i32) {
    %c0_i32 = arith.constant 0 : i32
    %c0_i32_0 = arith.constant 0 : i32
    %c0_i32_1 = arith.constant 0 : i32
    return %c0_i32, %c0_i32_0 : i32, i32
  }
  func.func @transform_3(%arg0: i32, %arg1: i32) -> (i32, i32) {
    %c0_i32 = arith.constant 0 : i32
    %c0_i32_0 = arith.constant 0 : i32
    %c0_i32_1 = arith.constant 0 : i32
    return %c0_i32, %c0_i32_0 : i32, i32
  }
  func.func @transform_4(%arg0: i32, %arg1: i32) -> i32 {
    %c0_i32 = arith.constant 0 : i32
    %c0_i32_0 = arith.constant 0 : i32
    return %c0_i32 : i32
  }
  func.func @transform_5(%arg0: i32, %arg1: i32) -> (i32, i32, i32) {
    %c0_i32 = arith.constant 0 : i32
    %c0_i32_0 = arith.constant 0 : i32
    return %arg0, %c0_i32, %arg1 : i32, i32, i32
  }
}

</mosaic_0001>

<bundles_post_ra>
// kernel: block2d_forward.1
= control target key start
LH: loop header
LB: loop body
LE: loop exit
PB: predicated region body
PF: predicated region fallthrough
CT: control target
= control target key end

     0   :  { %s2585_s20 = smov 0   ;;  %s2587_s21 = smov 0   ;;  %s3377_s0 = inlined_call_operand.vmem [shape: bf16[2,8,3072], index: 0, kind: input, shape index: {}, may-alias: {0,1}]   ;;  %s3378_s1 = inlined_call_operand.vmem [shape: bf16[2,8,3072], index: 1, kind: input, shape index: {}, may-alias: {0,1}]   ;;  %s3379_s2 = inlined_call_operand.vmem [shape: bf16[4,216], index: 2, kind: input, shape index: {}]   ;;  %s3380_s3 = inlined_call_operand.vmem [shape: f32[4,1], index: 3, kind: input, shape index: {}]   ;;  %s3381_s4 = inlined_call_operand.<no memory space> [shape: f32[1], index: 4, kind: input, shape index: {}]   ;;  %s3382_s5 = inlined_call_operand.vmem [shape: f32[2,4,2304], index: 5, kind: output, shape index: {}]  }
   0x1   :  { %10 = sst [smem:[#allocation4]] %s3381_s4  ;;  %s2589_s22 = smov 0  }
   0x2   :  { %s2591_s23 = smov 0   ;;  %s2593_s24 = smov 0  }
   0x3 LB: > { %s25_s4 = sadd.s32 1, %s2515_s22  ;;  %s28_s25 = sadd.s32 1, %s2519_s23  ;;  %s2523_s24 = sphi %s2593_s24, %s16_s24   ;;  %s2519_s23 = sphi %s2591_s23, %s3403_s23   ;;  %s2515_s22 = sphi %s2589_s22, %s3402_s22   ;;  %s2511_s21 = sphi %s2587_s21, %s3401_s21   ;;  %s2507_s20 = sphi %s2585_s20, %s3400_s20  }
   0x4   : > { %p26_p0 = scmp.ge.s32.totalorder %s25_s4, 3  ;;  %p2012_p1 = scmp.ge.s32.totalorder %s2523_s24, 1 }
   0x5   : > { %p230_p2 = scmp.lt.s32.totalorder %s2523_s24, 7 }
   0x6   : > { %s3405_s4 = smov (%p26_p0, %s25_s4), 0  ;;  %s3407_s25 = smov (!%p26_p0, %s28_s25), %s2519_s23 }
   0x7   : > { %p231_p3 = pnand %p2012_p1, %p230_p2  ;;  %p30_p4 = scmp.ge.s32.totalorder %s3407_s25, 2 }
   0x8   : > { %s2615_s26 = smul.u32 (!%p231_p3), 6, %s2507_s20  ;;  %p277_p5 = scmp.lt.s32.totalorder (!%p231_p3), %s2511_s21, 1 }
   0x9   : > { %s3409_s25 = smov (%p30_p4, %s3407_s25), 0  ;;  %234 = sbr.rel (%p231_p3) target bundleno = 570 (0x23a), region = 40 }
   0xa   : > { %p279_p6 = scmp.lt.s32.totalorder (!%p231_p3), %s2615_s26, 23  ;;  %s286_s27 = sadd.s32 (!%p231_p3), 1, %s2507_s20 }
   0xb   : > { %s287_s30 = smul.u32 (!%p231_p3), 6, %s286_s27  ;;  %s2525_s11 = smov (!%p231_p3), 127  }
   0xc   : > { %s2526_s12 = smov (!%p231_p3), 126   ;;  %s2527_s18 = smov (!%p231_p3), 110  }
   0xd   : > { %p290_p7 = scmp.lt.s32.totalorder (!%p231_p3), %s287_s30, 23  ;;  %s2528_s19 = smov (!%p231_p3), 109  }
   0xe   : > { %s3411_s21 = smov (!%p277_p5, %s2511_s21), 1  ;;  %s2529_s20 = smov 108   ;;  %vm347_vm0 = vcmask 1043456   ;;  %vm382_vm1 = vcmask 1031168   ;;  %vm349_vm2 = vcmask 1039360   ;;  %vm415_vm3 = vcmask 900096  }
   0xf   : > { %s2414_s28 = smul.u32 24, %s3411_s21  ;;  %s3413_s30 = smov (!%p290_p7, %s287_s30), 23  ;;  %vm448_vm4 = vcmask 891904   ;;  %vm481_vm5 = vcmask 883712   ;;  %vm778_vm6 = vcmask 326656   ;;  %vm811_vm7 = vcmask 195584  }
  0x10   : > { %s280_s29 = scalar_select %p279_p6, %s2615_s26, 23  ;;  %vm712_vm8 = vcmask 343040   ;;  %vm745_vm9 = vcmask 334848   ;;  %vm3385_vm10 = vcmask 670720   ;;  %vm646_vm11 = vcmask 482304  }
  0x11   : > { %s293_s13 = sadd.s32 %s2414_s28, %s3413_s30  ;;  %s2530_s27 = smov 40   ;;  %vm679_vm12 = vcmask 474112   ;;  %vm580_vm13 = vcmask 736256   ;;  %vm613_vm14 = vcmask 490496   ;;  %vm1108_vm15 = vcmask 687104  }
  0x12   : > { %s282_s6 = sadd.s32 %s2414_s28, %s280_s29  ;;  %s2014_s14 = sshll.u32 %s293_s13, 2 }
  0x13   : > { %s2013_s7 = sshll.u32 %s282_s6, 2  ;;  %s2640_s17 = scalar_lea.vmem %s3378_s1, %s2014_s14 }
  0x14   : > { %s284_s10 = scalar_lea.vmem %s3377_s0, %s2013_s7  ;;  %v2643_v3 = vld [vmem:[%s2640_s17] sm:$0xff]  ;;  %v316_v7 = vld [vmem:[%s2640_s17 + $0x8] sm:$0xff]  ;;  %s2531_s28 = smov 24   ;;  %v317_v13 = vld [vmem:[%s2640_s17 + $0x10] sm:$0xff] }
  0x15   : > { %v2625_v0 = vld [vmem:[%s284_s10 + $0x10] sm:$0xff]  ;;  %v2627_v1 = vld [vmem:[%s284_s10] sm:$0xff]  ;;  %v2634_v2 = vld [vmem:[%s284_s10 + $0x8] sm:$0xff]  ;;  %318 = vst [vmem:[#allocation2 + $0x18] sm:$0xff] %v2643_v3  ;;  %s2532_s29 = smov 41   ;;  %s2533_s30 = smov 42  }
  0x16   : > { %314 = vst [vmem:[#allocation2 + $0x10] sm:$0xff] %v2625_v0  ;;  %339 = vrot.lane.b32.xlu1 %v2625_v0, %s2525_s11  ;;  %369 = vrot.lane.b32.xlu2 %v2627_v1, %s2526_s12  ;;  %s3383_s6 = smov 82   ;;  %s2535_s7 = smov 58  }
  0x17   : > { %312 = vst [vmem:[#allocation2] sm:$0xff] %v2627_v1  ;;  %335 = vrot.lane.b32.xlu0 %v2627_v1, %s2525_s11  ;;  %s2536_s8 = smov 59   ;;  %s2537_s9 = smov 90  }
  0x18   : > { %313 = vst [vmem:[#allocation2 + $0x8] sm:$0xff] %v2634_v2  ;;  %s3384_s10 = smov 84   ;;  %s2541_s13 = smov 91  }
  0x19   : > { %319 = vst [vmem:[#allocation2 + $0x20] sm:$0xff] %v316_v7  ;;  %s2542_s14 = smov 92   ;;  %s2543_s15 = smov 101  }
  0x1a   : > { %320 = vst [vmem:[#allocation2 + $0x28] sm:$0xff] %v317_v13  ;;  %s2544_s16 = smov 100   ;;  %s2545_s17 = smov 102  }
  0x1b   : > { %p301_p8 = scmp.lt.s32.totalorder %s2615_s26, 17 }
  0x1c   : > { %v330_v4 = vld [vmem:[#allocation2 + $0x18] sm:$0xf] }
  0x1d   : > { %v364_v5 = vld [vmem:[#allocation2 + $0x18] sm:$0xf]  ;;  %v323_v21 = vld [vmem:[#allocation2 + $0x10] sm:$0xff]  ;;  %s3415_s26 = smov (!%p301_p8, %s2615_s26), 17 }
  0x1e   : > { %371 = vrot.lane.b32.xlu2 %v2634_v2, %s2526_s12  ;;  %341 = vrot.lane.b32.xlu1 %v330_v4, %s2525_s11  ;;  %v397_v6 = vld [vmem:[#allocation2 + $0x18] sm:$0xf]  ;;  %v321_v17 = vld [vmem:[#allocation2] sm:$0xff]  ;;  %326 = vst [vmem:[#allocation3 + $0x10] sm:$0xff] %v323_v21 }
  0x1f   : > { %337 = vrot.lane.b32.xlu0 %v2634_v2, %s2525_s11  ;;  %v430_v8 = vld [vmem:[#allocation2 + $0x18] sm:$0xf]  ;;  %s2539_s11 = smov 60   ;;  %v322_v18 = vld [vmem:[#allocation2 + $0x8] sm:$0xff]  ;;  %324 = vst [vmem:[#allocation3] sm:$0xff] %v321_v17 }
  0x20   : > { %v463_v9 = vld [vmem:[#allocation2 + $0x18] sm:$0xf]  ;;  %v2673_v10 = vld [vmem:[#allocation2 + $0x1c] sm:$0xff]  ;;  %325 = vst [vmem:[#allocation3 + $0x8] sm:$0xff] %v322_v18 }
  0x21   : > { %v2679_v11 = vld [vmem:[#allocation2 + $0x14] sm:$0xff]  ;;  %v2724_v31 = vld [vmem:[#allocation2 + $0x24] sm:$0xff] }
  0x26   : > { %402 = vrot.lane.b32.xlu2 %v2627_v1, %s2527_s18  ;;  %375 = vrot.lane.b32.xlu1 %v364_v5, %s2526_s12 }
  0x27   : > { %373 = vrot.lane.b32.xlu0 %v2625_v0, %s2526_s12  ;;  %s2540_s12 = smov 83  }
  0x2e   : > { %408 = vrot.lane.b32.xlu2 %v397_v6, %s2527_s18  ;;  %406 = vrot.lane.b32.xlu1 %v2625_v0, %s2527_s18 }
  0x2f   : > { %404 = vrot.lane.b32.xlu0 %v2634_v2, %s2527_s18  ;;  %s2546_s18 = smov 118  }
  0x36   : > { %439 = vrot.lane.b32.xlu2 %v2625_v0, %s2528_s19  ;;  %437 = vrot.lane.b32.xlu1 %v2634_v2, %s2528_s19 }
  0x37   : > { %435 = vrot.lane.b32.xlu0 %v2627_v1, %s2528_s19 }
  0x3e   : > { %470 = vrot.lane.b32.xlu2 %v2634_v2, %s2529_s20  ;;  %468 = vrot.lane.b32.xlu1 %v2627_v1, %s2529_s20 }
  0x3f   : > { %441 = vrot.lane.b32.xlu0 %v430_v8, %s2528_s19  ;;  %s2547_s19 = smov 119  }
  0x46   : > { %765 = vrot.lane.b32.xlu2 %v2634_v2, %s2530_s27  ;;  %474 = vrot.lane.b32.xlu1 %v463_v9, %s2529_s20 }
  0x47   : > { %472 = vrot.lane.b32.xlu0 %v2625_v0, %s2529_s20  ;;  %s2548_s20 = smov 120  }
  0x4e   : > { %800 = vrot.lane.b32.xlu2 %v2625_v0, %s2531_s28  ;;  %798 = vrot.lane.b32.xlu1 %v2634_v2, %s2531_s28 }
  0x4f   : > { %767 = vrot.lane.b32.xlu0 %v2625_v0, %s2530_s27 }
  0x56   : > { %732 = vrot.lane.b32.xlu2 %v2634_v2, %s2532_s29  ;;  %701 = vrot.lane.b32.xlu1 %v2625_v0, %s2533_s30 }
  0x57   : > { %699 = vrot.lane.b32.xlu0 %v2634_v2, %s2533_s30 }
  0x5e   : > { %1163 = vrot.lane.b32.xlu2 %v2673_v10, %s3383_s6  ;;  %1161 = vrot.lane.b32.xlu1 %v2679_v11, %s3383_s6 }
  0x5f   : > { %734 = vrot.lane.b32.xlu0 %v2625_v0, %s2532_s29 }
  0x66   : > { %666 = vrot.lane.b32.xlu2 %v2634_v2, %s2535_s7  ;;  %635 = vrot.lane.b32.xlu1 %v2625_v0, %s2536_s8 }
  0x67   : > { %633 = vrot.lane.b32.xlu0 %v2634_v2, %s2536_s8 }
  0x6e   : > { %569 = vrot.lane.b32.xlu2 %v2634_v2, %s2537_s9  ;;  %567 = vrot.lane.b32.xlu1 %v2627_v1, %s2537_s9 }
  0x6f   : > { %668 = vrot.lane.b32.xlu0 %v2625_v0, %s2535_s7 }
  0x70   : > { %v370_v12 = vpop.permute.xlu2 %369 }
  0x71   : > { %v377_v14 = vrot.slane %v370_v12, 4 }
  0x76   : > { %1095 = vrot.lane.b32.xlu2 %v2679_v11, %s3384_s10  ;;  %602 = vrot.lane.b32.xlu1 %v2625_v0, %s2539_s11 }
  0x77   : > { %600 = vrot.lane.b32.xlu0 %v2634_v2, %s2539_s11 }
  0x78   : > { %v372_v15 = vpop.permute.xlu2 %371 }
  0x79   : > { %v378_v16 = vrot.slane %v372_v15, 4 }
  0x7b   : > { %v381_v19 = vsel %vm347_vm0, %v377_v14, %v378_v16 }
  0x7c   : > { %v383_v20 = vsel %vm382_vm1, %v370_v12, %v381_v19 }
  0x7d   : > { %391 = vst [vmem:[#allocation3 + $0x30] sm:$0xff] %v383_v20 }
  0x7e   : > { %1130 = vrot.lane.b32.xlu2 %v2673_v10, %s2540_s12  ;;  %1128 = vrot.lane.b32.xlu1 %v2679_v11, %s2540_s12 }
  0x7f   : > { %1097 = vrot.lane.b32.xlu0 %v2673_v10, %s3384_s10 }
  0x80   : > { %v403_v22 = vpop.permute.xlu2 %402 }
  0x81   : > { %v410_v47 = vrot.slane %v403_v22, 4 }
  0x86   : > { %534 = vrot.lane.b32.xlu2 %v2627_v1, %s2541_s13  ;;  %503 = vrot.lane.b32.xlu1 %v2634_v2, %s2542_s14 }
  0x87   : > { %501 = vrot.lane.b32.xlu0 %v2627_v1, %s2542_s14 }
  0x88   : > { %v409_v23 = vpop.permute.xlu2 %408  ;;  %v340_v25 = vpop.permute.xlu1 %339 }
  0x89   : > { %v336_v24 = vpop.permute.xlu0 %335  ;;  %v345_v28 = vrot.slane %v340_v25, 4  ;;  %v413_v53 = vrot.slane %v409_v23, 4 }
  0x8a   : > { %v343_v29 = vrot.slane %v336_v24, 4 }
  0x8e   : > { %1031 = vrot.lane.b32.xlu2 %v2673_v10, %s2543_s15  ;;  %1029 = vrot.lane.b32.xlu1 %v2679_v11, %s2543_s15 }
  0x8f   : > { %536 = vrot.lane.b32.xlu0 %v2634_v2, %s2541_s13 }
  0x90   : > { %v2720_v26 = vpop.permute.xlu2 %439  ;;  %v342_v34 = vpop.permute.xlu1 %341 }
  0x91   : > { %v338_v27 = vpop.permute.xlu0 %337  ;;  %v346_v37 = vrot.slane %v342_v34, 4  ;;  %v445_v1 = vrot.slane %v2720_v26, 4 }
  0x92   : > { %v344_v30 = vrot.slane %v338_v27, 4 }
  0x93   : > { %v353_v38 = vsel %vm347_vm0, %v345_v28, %v346_v37 }
  0x94   : > { %v348_v32 = vsel %vm347_vm0, %v343_v29, %v344_v30  ;;  %v351_v33 = vsel %vm347_vm0, %v344_v30, %v345_v28  ;;  %v354_v40 = vsel %vm349_vm2, %v340_v25, %v353_v38 }
  0x95   : > { %v350_v35 = vsel %vm349_vm2, %v336_v24, %v348_v32  ;;  %v352_v36 = vsel %vm349_vm2, %v338_v27, %v351_v33  ;;  %360 = vst [vmem:[#allocation3 + $0x28] sm:$0xff] %v354_v40  ;;  %vm3387_vm2 = vcmask 752640  }
  0x96   : > { %358 = vst [vmem:[#allocation3 + $0x18] sm:$0xff] %v350_v35  ;;  %1165 = vrot.lane.b32.xlu2 %v2724_v31, %s3383_s6  ;;  %1064 = vrot.lane.b32.xlu1 %v2673_v10, %s2544_s16  ;;  %s2549_s6 = smov 23  }
  0x97   : > { %359 = vst [vmem:[#allocation3 + $0x20] sm:$0xff] %v352_v36  ;;  %1062 = vrot.lane.b32.xlu0 %v2679_v11, %s2544_s16 }
  0x98   : > { %v2735_v39 = vpop.permute.xlu2 %470  ;;  %v376_v44 = vpop.permute.xlu1 %375 }
  0x99   : > { %v374_v41 = vpop.permute.xlu0 %373  ;;  %v380_v46 = vrot.slane %v376_v44, 4  ;;  %v760_v44 = vld [vmem:[#allocation2 + $0x20] sm:$0xf] }
  0x9a   : > { %v379_v42 = vrot.slane %v374_v41, 4 }
  0x9c   : > { %v384_v43 = vsel %vm347_vm0, %v378_v16, %v379_v42  ;;  %v386_v48 = vsel %vm347_vm0, %v379_v42, %v380_v46  ;;  %v477_v16 = vrot.slane %v2735_v39, 4 }
  0x9d   : > { %v385_v45 = vsel %vm382_vm1, %v372_v15, %v384_v43  ;;  %v387_v50 = vsel %vm382_vm1, %v374_v41, %v386_v48  ;;  %vm1141_vm1 = vcmask 678912  }
  0x9e   : > { %392 = vst [vmem:[#allocation3 + $0x38] sm:$0xff] %v385_v45  ;;  %996 = vrot.lane.b32.xlu2 %v2679_v11, %s2545_s17  ;;  %965 = vrot.lane.b32.xlu1 %v2673_v10, %s2546_s18 }
  0x9f   : > { %963 = vrot.lane.b32.xlu0 %v2679_v11, %s2546_s18  ;;  %393 = vst [vmem:[#allocation3 + $0x40] sm:$0xff] %v387_v50 }
  0xa0   : > { %v2747_v49 = vpop.permute.xlu2 %765  ;;  %v407_v55 = vpop.permute.xlu1 %406 }
  0xa1   : > { %v405_v51 = vpop.permute.xlu0 %404  ;;  %v412_v57 = vrot.slane %v407_v55, 4 }
  0xa2   : > { %v411_v52 = vrot.slane %v405_v51, 4 }
  0xa3   : > { %v419_v58 = vsel %vm347_vm0, %v412_v57, %v413_v53 }
  0xa4   : > { %v414_v54 = vsel %vm347_vm0, %v410_v47, %v411_v52  ;;  %v417_v59 = vsel %vm347_vm0, %v411_v52, %v412_v57  ;;  %v420_v61 = vsel %vm415_vm3, %v407_v55, %v419_v58 }
  0xa5   : > { %v416_v56 = vsel %vm415_vm3, %v403_v22, %v414_v54  ;;  %v418_v62 = vsel %vm415_vm3, %v405_v51, %v417_v59  ;;  %426 = vst [vmem:[#allocation3 + $0x58] sm:$0xff] %v420_v61  ;;  %vm3386_vm3 = vcmask 744448  }
  0xa6   : > { %424 = vst [vmem:[#allocation3 + $0x48] sm:$0xff] %v416_v56  ;;  %802 = vrot.lane.b32.xlu2 %v2643_v3, %s2531_s28  ;;  %769 = vrot.lane.b32.xlu1 %v2643_v3, %s2530_s27 }
  0xa7   : > { %998 = vrot.lane.b32.xlu0 %v2673_v10, %s2545_s17  ;;  %425 = vst [vmem:[#allocation3 + $0x50] sm:$0xff] %v418_v62  ;;  %v793_v62 = vld [vmem:[#allocation2 + $0x20] sm:$0xf] }
  0xa8   : > { %v2759_v60 = vpop.permute.xlu2 %800  ;;  %v438_v5 = vpop.permute.xlu1 %437 }
  0xa9   : > { %v436_v63 = vpop.permute.xlu0 %435  ;;  %v444_v6 = vrot.slane %v438_v5, 4  ;;  %v807_v35 = vrot.slane %v2759_v60, 4 }
  0xaa   : > { %v443_v4 = vrot.slane %v436_v63, 4 }
  0xab   : > { %v450_v7 = vsel %vm347_vm0, %v444_v6, %v445_v1 }
  0xac   : > { %v447_v8 = vsel %vm347_vm0, %v443_v4, %v444_v6  ;;  %v451_v12 = vsel %vm448_vm4, %v438_v5, %v450_v7 }
  0xad   : > { %v449_v13 = vsel %vm448_vm4, %v436_v63, %v447_v8  ;;  %458 = vst [vmem:[#allocation3 + $0x68] sm:$0xff] %v451_v12 }
  0xae   : > { %930 = vrot.lane.b32.xlu2 %v2679_v11, %s2547_s19  ;;  %457 = vst [vmem:[#allocation3 + $0x60] sm:$0xff] %v449_v13  ;;  %899 = vrot.lane.b32.xlu1 %v2673_v10, %s2548_s20 }
  0xaf   : > { %897 = vrot.lane.b32.xlu0 %v2679_v11, %s2548_s20 }
  0xb0   : > { %v2770_v9 = vpop.permute.xlu2 %732  ;;  %v469_v17 = vpop.permute.xlu1 %468 }
  0xb1   : > { %v442_v14 = vpop.permute.xlu0 %441  ;;  %v476_v19 = vrot.slane %v469_v17, 4  ;;  %v740_v50 = vrot.slane %v2770_v9, 4 }
  0xb2   : > { %v446_v15 = vrot.slane %v442_v14, 4 }
  0xb3   : > { %v480_v20 = vsel %vm347_vm0, %v476_v19, %v477_v16 }
  0xb4   : > { %v452_v11 = vsel %vm347_vm0, %v445_v1, %v446_v15  ;;  %v482_v22 = vsel %vm481_vm5, %v469_v17, %v480_v20 }
  0xb5   : > { %v453_v18 = vsel %vm448_vm4, %v2720_v26, %v452_v11  ;;  %490 = vst [vmem:[#allocation3 + $0x78] sm:$0xff] %v482_v22  ;;  %vm1042_vm4 = vcmask 826368  }
  0xb6   : > { %459 = vst [vmem:[#allocation3 + $0x70] sm:$0xff] %v453_v18  ;;  %736 = vrot.lane.b32.xlu2 %v2643_v3, %s2532_s29  ;;  %703 = vrot.lane.b32.xlu1 %v2643_v3, %s2533_s30 }
  0xb7   : > { %932 = vrot.lane.b32.xlu0 %v2673_v10, %s2547_s19  ;;  %v773_v10 = vrot.slane %v2747_v49, 4 }
  0xb8   : > { %v2785_v21 = vpop.permute.xlu2 %1163  ;;  %v475_v26 = vpop.permute.xlu1 %474 }
  0xb9   : > { %v473_v23 = vpop.permute.xlu0 %472  ;;  %v479_v28 = vrot.slane %v475_v26, 4  ;;  %v1170_v59 = vrot.slane %v2785_v21, 4 }
  0xba   : > { %v478_v24 = vrot.slane %v473_v23, 4 }
  0xbc   : > { %v483_v25 = vsel %vm347_vm0, %v477_v16, %v478_v24  ;;  %v485_v29 = vsel %vm347_vm0, %v478_v24, %v479_v28 }
  0xbd   : > { %v484_v27 = vsel %vm481_vm5, %v2735_v39, %v483_v25  ;;  %v486_v32 = vsel %vm481_vm5, %v473_v23, %v485_v29  ;;  %vm3389_vm5 = vcmask 818176  }
  0xbe   : > { %491 = vst [vmem:[#allocation3 + $0x80] sm:$0xff] %v484_v27  ;;  %831 = vrot.lane.b32.xlu2 %v2634_v2, %s2549_s6  ;;  %1132 = vrot.lane.b32.xlu1 %v2724_v31, %s2540_s12 }
  0xbf   : > { %1099 = vrot.lane.b32.xlu0 %v2724_v31, %s3384_s10  ;;  %492 = vst [vmem:[#allocation3 + $0x88] sm:$0xff] %v486_v32  ;;  %s2550_s10 = smov 22  }
  0xc0   : > { %v2799_v30 = vpop.permute.xlu2 %666  ;;  %v799_v37 = vpop.permute.xlu1 %798 }
  0xc1   : > { %v2802_v33 = vpop.permute.xlu0 %767  ;;  %v806_v39 = vrot.slane %v799_v37, 4  ;;  %v674_v27 = vrot.slane %v2799_v30, 4 }
  0xc2   : > { %v774_v34 = vrot.slane %v2802_v33, 4 }
  0xc3   : > { %v810_v40 = vsel %vm347_vm0, %v806_v39, %v807_v35  ;;  %v727_v39 = vld [vmem:[#allocation2 + $0x20] sm:$0xf] }
  0xc4   : > { %v777_v36 = vsel %vm347_vm0, %v773_v10, %v774_v34  ;;  %v812_v42 = vsel %vm811_vm7, %v799_v37, %v810_v40 }
  0xc5   : > { %v779_v38 = vsel %vm778_vm6, %v2747_v49, %v777_v36  ;;  %820 = vst [vmem:[#allocation3 + $0x168] sm:$0xff] %v812_v42 }
  0xc6   : > { %787 = vst [vmem:[#allocation3 + $0x150] sm:$0xff] %v779_v38  ;;  %866 = vrot.lane.b32.xlu2 %v2625_v0, %s2550_s10  ;;  %864 = vrot.lane.b32.xlu1 %v2634_v2, %s2550_s10 }
  0xc7   : > { %833 = vrot.lane.b32.xlu0 %v2625_v0, %s2549_s6 }
  0xc8   : > { %v2820_v41 = vpop.permute.xlu2 %569  ;;  %v2825_v46 = vpop.permute.xlu1 %701 }
  0xc9   : > { %v700_v43 = vpop.permute.xlu0 %699  ;;  %v708_v47 = vrot.slane %v2825_v46, 4  ;;  %v576_v37 = vrot.slane %v2820_v41, 4 }
  0xca   : > { %v707_v45 = vrot.slane %v700_v43, 4 }
  0xcc   : > { %v711_v2 = vsel %vm347_vm0, %v707_v45, %v708_v47  ;;  %v2381_v53 = vld [vmem:[#allocation3 + $0x164] sm:$0xf0]  ;;  %v2188_v54 = vld [vmem:[#allocation3 + $0x168] sm:$0xf0] }
  0xcd   : > { %v2186_v48 = vld [vmem:[#allocation3 + $0x150] sm:$0xf]  ;;  %v2378_v49 = vld [vmem:[#allocation3 + $0x154] sm:$0xf]  ;;  %v713_v52 = vsel %vm712_vm8, %v700_v43, %v711_v2 }
  0xce   : > { %771 = vrot.lane.b32.xlu2 %v760_v44, %s2530_s27  ;;  %721 = vst [vmem:[#allocation3 + $0x120] sm:$0xff] %v713_v52  ;;  %v2187_v56 = vor.u32 %v2381_v53, %v2186_v48  ;;  %v2191_v57 = vor.u32 %v2378_v49, %v2188_v54  ;;  %670 = vrot.lane.b32.xlu1 %v2643_v3, %s2535_s7  ;;  %s3390_s27 = smov 82  }
  0xcf   : > { %637 = vrot.lane.b32.xlu0 %v2643_v3, %s2536_s8 }
  0xd0   : > { %v2835_v51 = vpop.permute.xlu2 %1095  ;;  %1706 = vmatpush.bf16.msra.mxu0 %v2187_v56  ;;  %1732 = vmatpush.bf16.msra.mxu2 %v2191_v57  ;;  %v1162_v63 = vpop.permute.xlu1 %1161 }
  0xd1   : > { %v2838_v55 = vpop.permute.xlu0 %734  ;;  %v1169_v4 = vrot.slane %v1162_v63, 4 }
  0xd2   : > { %v741_v58 = vrot.slane %v2838_v55, 4 }
  0xd3   : > { %v1173_v5 = vsel %vm347_vm0, %v1169_v4, %v1170_v59 }
  0xd4   : > { %v744_v61 = vsel %vm347_vm0, %v740_v50, %v741_v58  ;;  %v1175_v7 = vsel %vm3385_vm10, %v1162_v63, %v1173_v5  ;;  %v1103_v63 = vrot.slane %v2835_v51, 4 }
  0xd5   : > { %v746_v1 = vsel %vm745_vm9, %v2770_v9, %v744_v61  ;;  %v1516_v12 = vunpack.c.l.b16 %v1175_v7  ;;  %v1517_v13 = vunpack.c.h.b16 %v1175_v7  ;;  %v694_v9 = vld [vmem:[#allocation2 + $0x20] sm:$0xf]  ;;  %v2162_v15 = vld [vmem:[#allocation3 + $0x120] sm:$0xf]  ;;  %v2372_v19 = vld [vmem:[#allocation3 + $0x124] sm:$0xf] }
  0xd6   : > { %754 = vst [vmem:[#allocation3 + $0x138] sm:$0xff] %v746_v1  ;;  %1066 = vrot.lane.b32.xlu2 %v2724_v31, %s2544_s16  ;;  %1033 = vrot.lane.b32.xlu1 %v2724_v31, %s2543_s15 }
  0xd7   : > { %804 = vrot.lane.b32.xlu0 %v793_v62, %s2531_s28  ;;  %v1600_v16 = vpack.c.b16 %v1516_v12, %v1516_v12  ;;  %v1601_v11 = vpack.c.b16 %v1517_v13, %v1517_v13  ;;  %s3391_s28 = smov 84  }
  0xd8   : > { %v2855_v6 = vpop.permute.xlu2 %1130  ;;  %v2860_v17 = vpop.permute.xlu1 %635 }
  0xd9   : > { %v634_v8 = vpop.permute.xlu0 %633  ;;  %v642_v22 = vrot.slane %v2860_v17, 4  ;;  %v1689_v25 = vsel %vm347_vm0, %v1600_v16, 0  ;;  %v1692_v26 = vsel %vm347_vm0, %v1601_v11, 0  ;;  %v661_v16 = vld [vmem:[#allocation2 + $0x20] sm:$0xf] }
  0xda   : > { %v641_v14 = vrot.slane %v634_v8, 4  ;;  %1721 = vmatpush.bf16.msra.mxu1 %v1689_v25  ;;  %1747 = vmatpush.bf16.msra.mxu3 %v1692_v26 }
  0xdc   : > { %v645_v28 = vsel %vm347_vm0, %v641_v14, %v642_v22 }
  0xdd   : > { %v2375_v18 = vld [vmem:[#allocation3 + $0x134] sm:$0xf0]  ;;  %v2164_v20 = vld [vmem:[#allocation3 + $0x138] sm:$0xf0]  ;;  %v647_v29 = vsel %vm646_vm11, %v634_v8, %v645_v28 }
  0xde   : > { %705 = vrot.lane.b32.xlu2 %v694_v9, %s2533_s30  ;;  %v2163_v23 = vor.u32 %v2375_v18, %v2162_v15  ;;  %v2167_v24 = vor.u32 %v2372_v19, %v2164_v20  ;;  %655 = vst [vmem:[#allocation3 + $0xf0] sm:$0xff] %v647_v29  ;;  %604 = vrot.lane.b32.xlu1 %v2643_v3, %s2539_s11  ;;  %v1137_v9 = vrot.slane %v2855_v6, 4  ;;  %v562_v29 = vld [vmem:[#allocation2 + $0x18] sm:$0xf] }
  0xdf   : > { %571 = vrot.lane.b32.xlu0 %v2625_v0, %s2537_s9 }
  0xe0   : > { %1707 = vmatpush.bf16.msra.mxu0 %v2163_v23  ;;  %1733 = vmatpush.bf16.msra.mxu2 %v2167_v24  ;;  %v2872_v10 = vpop.permute.xlu2 %534  ;;  %v568_v40 = vpop.permute.xlu1 %567 }
  0xe1   : > { %v2875_v32 = vpop.permute.xlu0 %668  ;;  %v575_v43 = vrot.slane %v568_v40, 4 }
  0xe2   : > { %v675_v36 = vrot.slane %v2875_v32, 4 }
  0xe3   : > { %v579_v44 = vsel %vm347_vm0, %v575_v43, %v576_v37  ;;  %v542_v43 = vrot.slane %v2872_v10, 4 }
  0xe4   : > { %v678_v38 = vsel %vm347_vm0, %v674_v27, %v675_v36  ;;  %v581_v48 = vsel %vm580_vm13, %v568_v40, %v579_v44  ;;  %v595_v44 = vld [vmem:[#allocation2 + $0x20] sm:$0xf] }
  0xe5   : > { %v680_v42 = vsel %vm679_vm12, %v2799_v30, %v678_v38  ;;  %589 = vst [vmem:[#allocation3 + $0xc0] sm:$0xff] %v581_v48  ;;  %v628_v30 = vld [vmem:[#allocation2 + $0x20] sm:$0xf]  ;;  %v2366_v54 = vld [vmem:[#allocation3 + $0xf4] sm:$0xf] }
  0xe6   : > { %688 = vst [vmem:[#allocation3 + $0x108] sm:$0xff] %v680_v42  ;;  %1000 = vrot.lane.b32.xlu2 %v2724_v31, %s2545_s17  ;;  %967 = vrot.lane.b32.xlu1 %v2724_v31, %s2546_s18  ;;  %v2138_v2 = vld [vmem:[#allocation3 + $0xf0] sm:$0xf] }
  0xe7   : > { %738 = vrot.lane.b32.xlu0 %v727_v39, %s2532_s29 }
  0xe8   : > { %v2892_v45 = vpop.permute.xlu2 %1031  ;;  %v2897_v52 = vpop.permute.xlu1 %602 }
  0xe9   : > { %v601_v49 = vpop.permute.xlu0 %600  ;;  %v609_v57 = vrot.slane %v2897_v52, 4 }
  0xea   : > { %v608_v50 = vrot.slane %v601_v49, 4 }
  0xec   : > { %v612_v1 = vsel %vm347_vm0, %v608_v50, %v609_v57  ;;  %v2360_v24 = vld [vmem:[#allocation3 + $0xc4] sm:$0xf] }
  0xed   : > { %v2369_v53 = vld [vmem:[#allocation3 + $0x104] sm:$0xf0]  ;;  %v2140_v56 = vld [vmem:[#allocation3 + $0x108] sm:$0xf0]  ;;  %v614_v5 = vsel %vm613_vm14, %v601_v49, %v612_v1  ;;  %v1038_v1 = vrot.slane %v2892_v45, 4 }
  0xee   : > { %639 = vrot.lane.b32.xlu2 %v628_v30, %s2536_s8  ;;  %v2139_v61 = vor.u32 %v2369_v53, %v2138_v2  ;;  %v2143_v62 = vor.u32 %v2366_v54, %v2140_v56  ;;  %622 = vst [vmem:[#allocation3 + $0xd8] sm:$0xff] %v614_v5  ;;  %538 = vrot.lane.b32.xlu1 %v2625_v0, %s2541_s13  ;;  %s1862_s8 = sld [smem:[#allocation4]] }
  0xef   : > { %505 = vrot.lane.b32.xlu0 %v2625_v0, %s2542_s14 }
  0xf0   : > { %1708 = vmatpush.bf16.msra.mxu0 %v2139_v61  ;;  %1734 = vmatpush.bf16.msra.mxu2 %v2143_v62  ;;  %v2907_v4 = vpop.permute.xlu2 %1165  ;;  %v1129_v11 = vpop.permute.xlu1 %1128 }
  0xf1   : > { %v1171_v7 = vrot.slane %v2907_v4, 4  ;;  %v2911_v8 = vpop.permute.xlu0 %1097  ;;  %v1136_v18 = vrot.slane %v1129_v11, 4 }
  0xf2   : > { %v1104_v12 = vrot.slane %v2911_v8, 4 }
  0xf3   : > { %v1176_v13 = vsel %vm347_vm0, %v1170_v59, %v1171_v7  ;;  %v2114_v59 = vld [vmem:[#allocation3 + $0xc0] sm:$0xf] }
  0xf4   : > { %v2924_v14 = vsel %vm3385_vm10, %v2785_v21, %v1176_v13  ;;  %v1107_v15 = vsel %vm347_vm0, %v1103_v63, %v1104_v12  ;;  %v1140_v21 = vsel %vm347_vm0, %v1136_v18, %v1137_v9  ;;  %v496_v63 = vld [vmem:[#allocation2 + $0x18] sm:$0xf]  ;;  %vm3388_vm10 = vcmask 965632  }
  0xf5   : > { %v1109_v0 = vsel %vm1108_vm15, %v2835_v51, %v1107_v15  ;;  %v1142_v20 = vsel %vm1141_vm1, %v1129_v11, %v1140_v21  ;;  %v2363_v23 = vld [vmem:[#allocation3 + $0xd4] sm:$0xf0]  ;;  %v2116_v51 = vld [vmem:[#allocation3 + $0xd8] sm:$0xf0] }
  0xf6   : > { %1117 = vst [vmem:[#allocation3 + $0x240] sm:$0xff] %v1109_v0  ;;  %934 = vrot.lane.b32.xlu2 %v2724_v31, %s2547_s19  ;;  %v2115_v26 = vor.u32 %v2363_v23, %v2114_v59  ;;  %v2119_v27 = vor.u32 %v2360_v24, %v2116_v51  ;;  %901 = vrot.lane.b32.xlu1 %v2724_v31, %s2548_s20 }
  0xf7   : > { %672 = vrot.lane.b32.xlu0 %v661_v16, %s2535_s7  ;;  %1150 = vst [vmem:[#allocation3 + $0x258] sm:$0xff] %v1142_v20  ;;  %v529_v20 = vld [vmem:[#allocation2 + $0x18] sm:$0xf] }
  0xf8   : > { %v2937_v19 = vpop.permute.xlu2 %996  ;;  %1709 = vmatpush.bf16.msra.mxu0 %v2115_v26  ;;  %1735 = vmatpush.bf16.msra.mxu2 %v2119_v27  ;;  %v2942_v38 = vpop.permute.xlu1 %503 }
  0xf9   : > { %v502_v25 = vpop.permute.xlu0 %501  ;;  %v510_v39 = vrot.slane %v2942_v38, 4 }
  0xfa   : > { %v509_v28 = vrot.slane %v502_v25, 4 }
  0xfc   : > { %v513_v31 = vsel %vm347_vm0, %v509_v28, %v510_v39 }
  0xfd   : > { %v2306_v40 = vld [vmem:[#allocation3 + $0x240] sm:$0xf]  ;;  %v2408_v42 = vld [vmem:[#allocation3 + $0x244] sm:$0xf]  ;;  %v515_v49 = vsel %vm3387_vm2, %v502_v25, %v513_v31  ;;  %vm910_vm2 = vcmask 982016  }
  0xfe   : > { %835 = vrot.lane.b32.xlu2 %v2643_v3, %s2549_s6  ;;  %v2411_v30 = vld [vmem:[#allocation3 + $0x254] sm:$0xf0]  ;;  %v2308_v50 = vld [vmem:[#allocation3 + $0x258] sm:$0xf0]  ;;  %523 = vst [vmem:[#allocation3 + $0x90] sm:$0xff] %v515_v49  ;;  %606 = vrot.lane.b32.xlu1 %v595_v44, %s2539_s11 }
  0xff   : > { %573 = vrot.lane.b32.xlu0 %v562_v29, %s2537_s9  ;;  %v2307_v54 = vor.u32 %v2411_v30, %v2306_v40  ;;  %v2311_v56 = vor.u32 %v2408_v42, %v2308_v50  ;;  %v2351_v29 = vld [vmem:[#allocation3 + $0x74] sm:$0xf0]  ;;  %v2068_v40 = vld [vmem:[#allocation3 + $0x78] sm:$0xf0]  ;;  %v2066_v50 = vld [vmem:[#allocation3 + $0x60] sm:$0xf] }
 0x100   : > { %v2952_v48 = vpop.permute.xlu2 %802  ;;  %v1030_v15 = vpop.permute.xlu1 %1029  ;;  %s2415_s9 = smul.u32 18, %s3411_s21 }
 0x101   : > { %v808_v2 = vrot.slane %v2952_v48, 4  ;;  %v2956_v53 = vpop.permute.xlu0 %536  ;;  %1722 = vmatpush.bf16.msra.mxu1 %v2307_v54  ;;  %1748 = vmatpush.bf16.msra.mxu3 %v2311_v56  ;;  %v1037_v11 = vrot.slane %v1030_v15, 4  ;;  %v2348_v54 = vld [vmem:[#allocation3 + $0x64] sm:$0xf]  ;;  %v2067_v56 = vor.u32 %v2351_v29, %v2066_v50 }
 0x102   : > { %v543_v61 = vrot.slane %v2956_v53, 4 }
 0x103   : > { %v813_v62 = vsel %vm347_vm0, %v807_v35, %v808_v2  ;;  %v1156_v35 = vld [vmem:[#allocation2 + $0x2c] sm:$0xf] }
 0x104   : > { %v814_v5 = vsel %vm811_vm7, %v2759_v60, %v813_v62  ;;  %v546_v13 = vsel %vm347_vm0, %v542_v43, %v543_v61  ;;  %v1041_v60 = vsel %vm347_vm0, %v1037_v11, %v1038_v1  ;;  %v1090_v43 = vld [vmem:[#allocation2 + $0x2c] sm:$0xf]  ;;  %v2071_v62 = vor.u32 %v2348_v54, %v2068_v40 }
 0x105   : > { %821 = vst [vmem:[#allocation3 + $0x170] sm:$0xff] %v814_v5  ;;  %v548_v16 = vsel %vm3386_vm3, %v2872_v10, %v546_v13  ;;  %v1043_v18 = vsel %vm1042_vm4, %v1030_v15, %v1041_v60  ;;  %v1123_v10 = vld [vmem:[#allocation2 + $0x2c] sm:$0xf]  ;;  %v2090_v23 = vld [vmem:[#allocation3 + $0x90] sm:$0xf]  ;;  %vm1009_vm3 = vcmask 834560  }
 0x106   : > { %556 = vst [vmem:[#allocation3 + $0xa8] sm:$0xff] %v548_v16  ;;  %507 = vrot.lane.b32.xlu2 %v496_v63, %s2542_s14  ;;  %1167 = vrot.lane.b32.xlu1 %v1156_v35, %s3390_s27  ;;  %v2354_v51 = vld [vmem:[#allocation3 + $0x94] sm:$0xf]  ;;  %v958_v5 = vld [vmem:[#allocation2 + $0x2c] sm:$0xf] }
 0x107   : > { %868 = vrot.lane.b32.xlu0 %v2643_v3, %s2550_s10  ;;  %1051 = vst [vmem:[#allocation3 + $0x210] sm:$0xff] %v1043_v18  ;;  %v2345_v13 = vld [vmem:[#allocation3 + $0x44] sm:$0xf0]  ;;  %v2044_v15 = vld [vmem:[#allocation3 + $0x48] sm:$0xf0] }
 0x108   : > { %v2979_v0 = vpop.permute.xlu2 %930  ;;  %v2983_v24 = vpop.permute.xlu1 %1064  ;;  %v1024_v60 = vld [vmem:[#allocation2 + $0x2c] sm:$0xf]  ;;  %v2042_v18 = vld [vmem:[#allocation3 + $0x30] sm:$0xf] }
 0x109   : > { %v1063_v21 = vpop.permute.xlu0 %1062  ;;  %v1071_v26 = vrot.slane %v2983_v24, 4 }
 0x10a   : > { %v1070_v59 = vrot.slane %v1063_v21, 4 }
 0x10c   : > { %v1074_v42 = vsel %vm347_vm0, %v1070_v59, %v1071_v26 }
 0x10d   : > { %v2357_v3 = vld [vmem:[#allocation3 + $0xa4] sm:$0xf0]  ;;  %v2092_v25 = vld [vmem:[#allocation3 + $0xa8] sm:$0xf0]  ;;  %v1076_v44 = vsel %vm3389_vm5, %v1063_v21, %v1074_v42  ;;  %v2342_v21 = vld [vmem:[#allocation3 + $0x34] sm:$0xf] }
 0x10e   : > { %1134 = vrot.lane.b32.xlu2 %v1123_v10, %s2540_s12  ;;  %v2091_v27 = vor.u32 %v2357_v3, %v2090_v23  ;;  %v2095_v28 = vor.u32 %v2354_v51, %v2092_v25  ;;  %1084 = vst [vmem:[#allocation3 + $0x228] sm:$0xff] %v1076_v44  ;;  %1101 = vrot.lane.b32.xlu1 %v1090_v43, %s3391_s28  ;;  %v1519_v10 = vunpack.c.h.b16 %v2924_v14  ;;  %v2018_v23 = vld [vmem:[#allocation3] sm:$0xf]  ;;  %v2336_v3 = vld [vmem:[#allocation3 + $0x4] sm:$0xf]  ;;  %v1004_v25 = vrot.slane %v2937_v19, 4 }
 0x10f   : > { %540 = vrot.lane.b32.xlu0 %v529_v20, %s2541_s13  ;;  %v2047_v20 = vor.u32 %v2342_v21, %v2044_v15  ;;  %v2020_v51 = vld [vmem:[#allocation3 + $0x18] sm:$0xf0]  ;;  %v2282_v29 = vld [vmem:[#allocation3 + $0x210] sm:$0xf]  ;;  %v2402_v44 = vld [vmem:[#allocation3 + $0x214] sm:$0xf] }
 0x110   : > { %1710 = vmatpush.bf16.msra.mxu0 %v2091_v27  ;;  %1736 = vmatpush.bf16.msra.mxu2 %v2095_v28  ;;  %v2991_v31 = vpop.permute.xlu2 %736  ;;  %v3003_v35 = vpop.permute.xlu1 %965  ;;  %v1057_v28 = vld [vmem:[#allocation2 + $0x2c] sm:$0xf]  ;;  %v2023_v15 = vor.u32 %v2336_v3, %v2020_v51  ;;  %v826_v51 = vld [vmem:[#allocation2 + $0x20] sm:$0xf] }
 0x111   : > { %v742_v49 = vrot.slane %v2991_v31, 4  ;;  %v964_v30 = vpop.permute.xlu0 %963  ;;  %v972_v59 = vrot.slane %v3003_v35, 4 }
 0x112   : > { %v971_v11 = vrot.slane %v964_v30, 4 }
 0x113   : > { %v747_v63 = vsel %vm347_vm0, %v741_v58, %v742_v49  ;;  %v2043_v58 = vor.u32 %v2345_v13, %v2042_v18 }
 0x114   : > { %v748_v16 = vsel %vm745_vm9, %v2838_v55, %v747_v63  ;;  %1711 = vmatpush.bf16.msra.mxu0 %v2067_v56  ;;  %1737 = vmatpush.bf16.msra.mxu2 %v2071_v62  ;;  %v2339_v55 = vld [vmem:[#allocation3 + $0x14] sm:$0xf0]  ;;  %v975_v27 = vsel %vm347_vm0, %v971_v11, %v972_v59  ;;  %v1603_v56 = vpack.c.b16 %v1519_v10, %v1519_v10  ;;  %v991_v11 = vld [vmem:[#allocation2 + $0x2c] sm:$0xf] }
 0x115   : > { %755 = vst [vmem:[#allocation3 + $0x140] sm:$0xff] %v748_v16  ;;  %v977_v42 = vsel %vm3388_vm10, %v964_v30, %v975_v27  ;;  %v2405_v43 = vld [vmem:[#allocation3 + $0x224] sm:$0xf0]  ;;  %v2284_v50 = vld [vmem:[#allocation3 + $0x228] sm:$0xf0]  ;;  %v2019_v13 = vor.u32 %v2339_v55, %v2018_v23  ;;  %vm943_vm10 = vcmask 973824  }
 0x116   : > { %969 = vrot.lane.b32.xlu2 %v958_v5, %s2546_s18  ;;  %985 = vst [vmem:[#allocation3 + $0x1e0] sm:$0xff] %v977_v42  ;;  %v2283_v62 = vor.u32 %v2405_v43, %v2282_v29  ;;  %v2287_v63 = vor.u32 %v2402_v44, %v2284_v50  ;;  %1068 = vrot.lane.b32.xlu1 %v1057_v28, %s2544_s16  ;;  %v925_v16 = vld [vmem:[#allocation2 + $0x2c] sm:$0xf]  ;;  %v1698_v21 = vsel %vm347_vm0, %v1603_v56, 0  ;;  %v859_v56 = vld [vmem:[#allocation2 + $0x20] sm:$0xf] }
 0x117   : > { %1035 = vrot.lane.b32.xlu0 %v1024_v60, %s2543_s15 }
 0x118   : > { %1712 = vmatpush.bf16.msra.mxu0 %v2043_v58  ;;  %1738 = vmatpush.bf16.msra.mxu2 %v2047_v20  ;;  %v3013_v40 = vpop.permute.xlu2 %831  ;;  %v770_v60 = vpop.permute.xlu1 %769  ;;  %v892_v20 = vld [vmem:[#allocation2 + $0x2c] sm:$0xf] }
 0x119   : > { %v3016_v54 = vpop.permute.xlu0 %998  ;;  %1723 = vmatpush.bf16.msra.mxu1 %v2283_v62  ;;  %1749 = vmatpush.bf16.msra.mxu3 %v2287_v63  ;;  %v775_v10 = vrot.slane %v770_v60, 4 }
 0x11a   : > { %v1005_v5 = vrot.slane %v3016_v54, 4 }
 0x11b   : > { %v780_v58 = vsel %vm347_vm0, %v774_v34, %v775_v10 }
 0x11c   : > { %v1008_v30 = vsel %vm347_vm0, %v1004_v25, %v1005_v5  ;;  %1713 = vmatpush.bf16.msra.mxu0 %v2019_v13  ;;  %1739 = vmatpush.bf16.msra.mxu2 %v2023_v15  ;;  %v2196_v15 = vld [vmem:[#allocation3 + $0x170] sm:$0xf0] }
 0x11d   : > { %v1010_v18 = vsel %vm1009_vm3, %v2937_v19, %v1008_v30  ;;  %v781_v19 = vsel %vm778_vm6, %v2802_v33, %v780_v58  ;;  %v2258_v25 = vld [vmem:[#allocation3 + $0x1e0] sm:$0xf]  ;;  %v2396_v29 = vld [vmem:[#allocation3 + $0x1e4] sm:$0xf]  ;;  %v938_v33 = vrot.slane %v2979_v0, 4 }
 0x11e   : > { %1018 = vst [vmem:[#allocation3 + $0x1f8] sm:$0xff] %v1010_v18  ;;  %936 = vrot.lane.b32.xlu2 %v925_v16, %s2547_s19  ;;  %903 = vrot.lane.b32.xlu1 %v892_v20, %s2548_s20 }
 0x11f   : > { %1002 = vrot.lane.b32.xlu0 %v991_v11, %s2545_s17  ;;  %788 = vst [vmem:[#allocation3 + $0x158] sm:$0xff] %v781_v19 }
 0x120   : > { %1799 = vmatpush.bf16.msrb.mxu2 %v1698_v21  ;;  %v3031_v23 = vpop.permute.xlu2 %866  ;;  %v3036_v27 = vpop.permute.xlu1 %899 }
 0x121   : > { %v898_v55 = vpop.permute.xlu0 %897  ;;  %v906_v34 = vrot.slane %v3036_v27, 4 }
 0x122   : > { %v905_v3 = vrot.slane %v898_v55, 4 }
 0x124   : > { %v909_v50 = vsel %vm347_vm0, %v905_v3, %v906_v34 }
 0x125   : > { %v2399_v28 = vld [vmem:[#allocation3 + $0x1f4] sm:$0xf0]  ;;  %v2260_v42 = vld [vmem:[#allocation3 + $0x1f8] sm:$0xf0]  ;;  %v911_v63 = vsel %vm910_vm2, %v898_v55, %v909_v50 }
 0x126   : > { %v2259_v43 = vor.u32 %v2399_v28, %v2258_v25  ;;  %v2263_v44 = vor.u32 %v2396_v29, %v2260_v42  ;;  %v2379_v13 = vld [vmem:[#allocation3 + $0x15c] sm:$0xf]  ;;  %919 = vst [vmem:[#allocation3 + $0x1b0] sm:$0xff] %v911_v63  ;;  %870 = vrot.lane.b32.xlu1 %v859_v56, %s2550_s10  ;;  %v839_v63 = vrot.slane %v3013_v40, 4  ;;  %s304_s10 = sadd.s32 %s2415_s9, %s3415_s26 }
 0x127   : > { %837 = vrot.lane.b32.xlu0 %v826_v51, %s2549_s6  ;;  %v2199_v11 = vor.u32 %v2379_v13, %v2196_v15  ;;  %s2015_s11 = sshll.u32 %s304_s10, 2 }
 0x128   : > { %1724 = vmatpush.bf16.msra.mxu1 %v2259_v43  ;;  %1750 = vmatpush.bf16.msra.mxu3 %v2263_v44  ;;  %v772_v62 = vpop.permute.xlu2 %771  ;;  %v704_v19 = vpop.permute.xlu1 %703  ;;  %s3354_s13 = scalar_lea.vmem %s3382_s5, %s2015_s11 }
 0x129   : > { %v776_v16 = vrot.slane %v772_v62, 4  ;;  %v3045_v30 = vpop.permute.xlu0 %932  ;;  %1784 = vmatpush.bf16.msrb.mxu0 %v2199_v11  ;;  %v709_v3 = vrot.slane %v704_v19, 4 }
 0x12a   : > { %v939_v18 = vrot.slane %v3045_v30, 4 }
 0x12b   : > { %v782_v21 = vsel %vm347_vm0, %v775_v10, %v776_v16  ;;  %v714_v51 = vsel %vm347_vm0, %v708_v47, %v709_v3  ;;  %v2172_v16 = vld [vmem:[#allocation3 + $0x140] sm:$0xf0] }
 0x12c   : > { %v783_v58 = vsel %vm778_vm6, %v770_v60, %v782_v21  ;;  %v942_v20 = vsel %vm347_vm0, %v938_v33, %v939_v18  ;;  %v715_v60 = vsel %vm712_vm8, %v2825_v46, %v714_v51  ;;  %vm844_vm6 = vcmask 187392  }
 0x12d   : > { %789 = vst [vmem:[#allocation3 + $0x160] sm:$0xff] %v783_v58  ;;  %v944_v55 = vsel %vm943_vm10, %v2979_v0, %v942_v20  ;;  %v2234_v42 = vld [vmem:[#allocation3 + $0x1b0] sm:$0xf]  ;;  %v2390_v43 = vld [vmem:[#allocation3 + $0x1b4] sm:$0xf] }
 0x12e   : > { %952 = vst [vmem:[#allocation3 + $0x1c8] sm:$0xff] %v944_v55 }
 0x12f   : > { %722 = vst [vmem:[#allocation3 + $0x128] sm:$0xff] %v715_v60 }
 0x130   : > { %v3059_v25 = vpop.permute.xlu2 %1066  ;;  %v3079_v44 = vpop.permute.xlu1 %1132 }
 0x131   : > { %v1072_v10 = vrot.slane %v3059_v25, 4  ;;  %v3064_v28 = vpop.permute.xlu0 %1099 }
 0x132   : > { %v1105_v29 = vrot.slane %v3064_v28, 4 }
 0x133   : > { %v1077_v0 = vsel %vm347_vm0, %v1071_v26, %v1072_v10  ;;  %v1138_v26 = vrot.slane %v3079_v44, 4 }
 0x134   : > { %v1078_v47 = vsel %vm3389_vm5, %v2983_v24, %v1077_v0  ;;  %v1110_v46 = vsel %vm347_vm0, %v1104_v12, %v1105_v29  ;;  %vm877_vm5 = vcmask 179200  }
 0x135   : > { %1085 = vst [vmem:[#allocation3 + $0x230] sm:$0xff] %v1078_v47  ;;  %v1111_v33 = vsel %vm1108_vm15, %v2911_v8, %v1110_v46  ;;  %v2393_v50 = vld [vmem:[#allocation3 + $0x1c4] sm:$0xf0]  ;;  %v2236_v56 = vld [vmem:[#allocation3 + $0x1c8] sm:$0xf0]  ;;  %v1143_v12 = vsel %vm347_vm0, %v1137_v9, %v1138_v26  ;;  %v873_v9 = vrot.slane %v3031_v23, 4 }
 0x136   : > { %1118 = vst [vmem:[#allocation3 + $0x248] sm:$0xff] %v1111_v33  ;;  %v2235_v24 = vor.u32 %v2393_v50, %v2234_v42  ;;  %v2239_v62 = vor.u32 %v2390_v43, %v2236_v56  ;;  %v1144_v8 = vsel %vm1141_vm1, %v2855_v6, %v1143_v12  ;;  %v2373_v15 = vld [vmem:[#allocation3 + $0x12c] sm:$0xf] }
 0x137   : > { %1151 = vst [vmem:[#allocation3 + $0x260] sm:$0xff] %v1144_v8  ;;  %v2175_v58 = vor.u32 %v2373_v15, %v2172_v16 }
 0x138   : > { %1725 = vmatpush.bf16.msra.mxu1 %v2235_v24  ;;  %1751 = vmatpush.bf16.msra.mxu3 %v2239_v62  ;;  %v706_v13 = vpop.permute.xlu2 %705  ;;  %v865_v60 = vpop.permute.xlu1 %864  ;;  %v1518_v62 = vunpack.c.l.b16 %v2924_v14 }
 0x139   : > { %v710_v11 = vrot.slane %v706_v13, 4  ;;  %v3092_v21 = vpop.permute.xlu0 %833  ;;  %1785 = vmatpush.bf16.msrb.mxu0 %v2175_v58  ;;  %v872_v47 = vrot.slane %v865_v60, 4 }
 0x13a   : > { %v840_v20 = vrot.slane %v3092_v21, 4  ;;  %v1602_v14 = vpack.c.b16 %v1518_v62, %v1518_v62 }
 0x13b   : > { %v716_v55 = vsel %vm347_vm0, %v709_v3, %v710_v11  ;;  %v876_v3 = vsel %vm347_vm0, %v872_v47, %v873_v9  ;;  %v2382_v47 = vld [vmem:[#allocation3 + $0x16c] sm:$0xf0] }
 0x13c   : > { %v717_v51 = vsel %vm712_vm8, %v704_v19, %v716_v55  ;;  %v843_v6 = vsel %vm347_vm0, %v839_v63, %v840_v20  ;;  %v878_v19 = vsel %vm877_vm5, %v865_v60, %v876_v3  ;;  %vm3393_vm8 = vcmask 752640  }
 0x13d   : > { %723 = vst [vmem:[#allocation3 + $0x130] sm:$0xff] %v717_v51  ;;  %v845_v0 = vsel %vm844_vm6, %v3013_v40, %v843_v6  ;;  %v2409_v46 = vld [vmem:[#allocation3 + $0x24c] sm:$0xf] }
 0x13e   : > { %853 = vst [vmem:[#allocation3 + $0x180] sm:$0xff] %v845_v0  ;;  %v2316_v43 = vld [vmem:[#allocation3 + $0x260] sm:$0xf0]  ;;  %v2412_v62 = vld [vmem:[#allocation3 + $0x25c] sm:$0xf0] }
 0x13f   : > { %886 = vst [vmem:[#allocation3 + $0x198] sm:$0xff] %v878_v19  ;;  %v2319_v56 = vor.u32 %v2409_v46, %v2316_v43  ;;  %v1695_v43 = vsel %vm347_vm0, %v1602_v14, 0 }
 0x140   : > { %v3106_v42 = vpop.permute.xlu2 %1000  ;;  %v3121_v13 = vpop.permute.xlu1 %670 }
 0x141   : > { %v1006_v33 = vrot.slane %v3106_v42, 4  ;;  %v638_v50 = vpop.permute.xlu0 %637  ;;  %1800 = vmatpush.bf16.msrb.mxu2 %v2319_v56  ;;  %v676_v15 = vrot.slane %v3121_v13, 4  ;;  %v2170_v56 = vld [vmem:[#allocation3 + $0x128] sm:$0xf] }
 0x142   : > { %v643_v24 = vrot.slane %v638_v50, 4 }
 0x143   : > { %v1011_v40 = vsel %vm347_vm0, %v1005_v5, %v1006_v33 }
 0x144   : > { %v1012_v63 = vsel %vm1009_vm3, %v3016_v54, %v1011_v40  ;;  %v648_v12 = vsel %vm347_vm0, %v642_v22, %v643_v24  ;;  %v681_v54 = vsel %vm347_vm0, %v675_v36, %v676_v15  ;;  %v2194_v22 = vld [vmem:[#allocation3 + $0x158] sm:$0xf]  ;;  %v2314_v40 = vld [vmem:[#allocation3 + $0x248] sm:$0xf] }
 0x145   : > { %1019 = vst [vmem:[#allocation3 + $0x200] sm:$0xff] %v1012_v63  ;;  %v649_v8 = vsel %vm646_vm11, %v2860_v17, %v648_v12  ;;  %v2210_v5 = vld [vmem:[#allocation3 + $0x180] sm:$0xf]  ;;  %v2384_v16 = vld [vmem:[#allocation3 + $0x184] sm:$0xf]  ;;  %v682_v58 = vsel %vm679_vm12, %v2875_v32, %v681_v54  ;;  %v2195_v19 = vor.u32 %v2382_v47, %v2194_v22 }
 0x146   : > { %656 = vst [vmem:[#allocation3 + $0xf8] sm:$0xff] %v649_v8  ;;  %v2387_v55 = vld [vmem:[#allocation3 + $0x194] sm:$0xf0]  ;;  %v2212_v51 = vld [vmem:[#allocation3 + $0x198] sm:$0xf0] }
 0x147   : > { %689 = vst [vmem:[#allocation3 + $0x110] sm:$0xff] %v682_v58  ;;  %v2211_v60 = vor.u32 %v2387_v55, %v2210_v5  ;;  %v2215_v0 = vor.u32 %v2384_v16, %v2212_v51  ;;  %v2376_v8 = vld [vmem:[#allocation3 + $0x13c] sm:$0xf0]  ;;  %v2315_v5 = vor.u32 %v2412_v62, %v2314_v40 }
 0x148   : > { %v640_v11 = vpop.permute.xlu2 %639  ;;  %v3139_v63 = vpop.permute.xlu1 %1033 }
 0x149   : > { %v644_v17 = vrot.slane %v640_v11, 4  ;;  %v805_v6 = vpop.permute.xlu0 %804  ;;  %1726 = vmatpush.bf16.msra.mxu1 %v2211_v60  ;;  %1752 = vmatpush.bf16.msra.mxu3 %v2215_v0  ;;  %v1039_v12 = vrot.slane %v3139_v63, 4 }
 0x14a   : > { %v809_v46 = vrot.slane %v805_v6, 4 }
 0x14b   : > { %v650_v3 = vsel %vm347_vm0, %v643_v24, %v644_v17 }
 0x14c   : > { %v651_v36 = vsel %vm646_vm11, %v638_v50, %v650_v3  ;;  %v815_v32 = vsel %vm347_vm0, %v808_v2, %v809_v46  ;;  %v2171_v50 = vor.u32 %v2376_v8, %v2170_v56  ;;  %v1044_v2 = vsel %vm347_vm0, %v1038_v1, %v1039_v12  ;;  %v2292_v3 = vld [vmem:[#allocation3 + $0x230] sm:$0xf0]  ;;  %v1186_v8 = vld [vmem:[%s3379_s2] sm:$0xf] }
 0x14d   : > { %657 = vst [vmem:[#allocation3 + $0x100] sm:$0xff] %v651_v36  ;;  %1758 = vmatpush.bf16.msrb.mxu1 %v2195_v19  ;;  %1773 = vmatpush.bf16.msrb.mxu3 %v1695_v43  ;;  %v816_v24 = vsel %vm811_vm7, %v2952_v48, %v815_v32  ;;  %v2367_v16 = vld [vmem:[#allocation3 + $0xfc] sm:$0xf]  ;;  %v2146_v14 = vld [vmem:[#allocation3 + $0xf8] sm:$0xf]  ;;  %v1045_v11 = vsel %vm1042_vm4, %v2892_v45, %v1044_v2  ;;  %vm3392_vm7 = vcmask 965632  }
 0x14e   : > { %822 = vst [vmem:[#allocation3 + $0x178] sm:$0xff] %v816_v24  ;;  %v2148_v48 = vld [vmem:[#allocation3 + $0x110] sm:$0xf0]  ;;  %v2370_v58 = vld [vmem:[#allocation3 + $0x10c] sm:$0xf0]  ;;  %vm1684_vm11 = vcmask 719872  }
 0x14f   : > { %1052 = vst [vmem:[#allocation3 + $0x218] sm:$0xff] %v1045_v11  ;;  %v2151_v51 = vor.u32 %v2367_v16, %v2148_v48  ;;  %v2147_v17 = vor.u32 %v2370_v58, %v2146_v14 }
 0x150   : > { %v3149_v54 = vpop.permute.xlu2 %934  ;;  %v3169_v0 = vpop.permute.xlu1 %604  ;;  %1275 = vst [vmem:[#allocation1] ss:$4 sm:$0xff] %v1186_v8 }
 0x151   : > { %1759 = vmatpush.bf16.msrb.mxu1 %v2171_v50  ;;  %1774 = vmatpush.bf16.msrb.mxu3 %v2315_v5  ;;  %v940_v22 = vrot.slane %v3149_v54, 4  ;;  %v3154_v55 = vpop.permute.xlu0 %571  ;;  %v610_v46 = vrot.slane %v3169_v0, 4 }
 0x152   : > { %v577_v6 = vrot.slane %v3154_v55, 4  ;;  %1786 = vmatpush.bf16.msrb.mxu0 %v2151_v51 }
 0x153   : > { %v945_v1 = vsel %vm347_vm0, %v939_v18, %v940_v22  ;;  %v2406_v18 = vld [vmem:[#allocation3 + $0x22c] sm:$0xf0] }
 0x154   : > { %v946_v45 = vsel %vm943_vm10, %v3045_v30, %v945_v1  ;;  %v582_v60 = vsel %vm347_vm0, %v576_v37, %v577_v6  ;;  %v615_v30 = vsel %vm347_vm0, %v609_v57, %v610_v46 }
 0x155   : > { %953 = vst [vmem:[#allocation3 + $0x1d0] sm:$0xff] %v946_v45  ;;  %1760 = vmatpush.bf16.msrb.mxu1 %v2147_v17  ;;  %v583_v47 = vsel %vm580_vm13, %v2820_v41, %v582_v60  ;;  %v616_v37 = vsel %vm613_vm14, %v2897_v52, %v615_v30 }
 0x156   : > { %590 = vst [vmem:[#allocation3 + $0xc8] sm:$0xff] %v583_v47  ;;  %v2290_v43 = vld [vmem:[#allocation3 + $0x218] sm:$0xf]  ;;  %v2403_v36 = vld [vmem:[#allocation3 + $0x21c] sm:$0xf] }
 0x157   : > { %623 = vst [vmem:[#allocation3 + $0xe0] sm:$0xff] %v616_v37  ;;  %v2291_v56 = vor.u32 %v2406_v18, %v2290_v43  ;;  %v2295_v40 = vor.u32 %v2403_v36, %v2292_v3  ;;  %v3219_v18 = vld.sshfl [vmem:[#allocation1] sm:$0xff pattern:$0x73625140]  ;;  %v2268_v37 = vld [vmem:[#allocation3 + $0x200] sm:$0xf0] }
 0x158   : > { %v3179_v19 = vpop.permute.xlu2 %835  ;;  %v3197_v50 = vpop.permute.xlu1 %967  ;;  %1740 = vmatmul.bf16.vlgmr.msra.gmra.mxu2 %v3219_v18  ;;  %v3222_v3 = vld.sshfl [vmem:[#allocation1 + $0x8] sm:$0xff pattern:$0x73625140]  ;;  %1714 = vmatmul.bf16.vlgmr.msra.gmra.mxu0 %v3219_v18 }
 0x159   : > { %v841_v41 = vrot.slane %v3179_v19, 4  ;;  %v739_v32 = vpop.permute.xlu0 %738  ;;  %1775 = vmatpush.bf16.msrb.mxu3 %v2291_v56  ;;  %1801 = vmatpush.bf16.msrb.mxu2 %v2295_v40 }
 0x15a   : > { %v743_v62 = vrot.slane %v739_v32, 4  ;;  %2329 = vmatmul.msk.bf16.vlgmr.msra.gmra.mxu3 %vm1684_vm11, %v3222_v3  ;;  %2328 = vmatmul.msk.bf16.vlgmr.msra.gmra.mxu1 %vm1684_vm11, %v3222_v3 }
 0x15b   : > { %v846_v57 = vsel %vm347_vm0, %v840_v20, %v841_v41  ;;  %v973_v20 = vrot.slane %v3197_v50, 4 }
 0x15c   : > { %v847_v52 = vsel %vm844_vm6, %v3092_v21, %v846_v57  ;;  %v749_v24 = vsel %vm347_vm0, %v742_v49, %v743_v62 }
 0x15d   : > { %854 = vst [vmem:[#allocation3 + $0x188] sm:$0xff] %v847_v52  ;;  %v750_v5 = vsel %vm745_vm9, %v2991_v31, %v749_v24  ;;  %v2122_v16 = vld [vmem:[#allocation3 + $0xc8] sm:$0xf]  ;;  %v2361_v14 = vld [vmem:[#allocation3 + $0xcc] sm:$0xf]  ;;  %v978_v49 = vsel %vm347_vm0, %v972_v59, %v973_v20  ;;  %vm3394_vm9 = vmmov %vm3393_vm8 }
 0x15e   : > { %756 = vst [vmem:[#allocation3 + $0x148] sm:$0xff] %v750_v5  ;;  %v979_v2 = vsel %vm3392_vm7, %v3003_v35, %v978_v49  ;;  %v2364_v11 = vld [vmem:[#allocation3 + $0xdc] sm:$0xf0]  ;;  %v2124_v48 = vld [vmem:[#allocation3 + $0xe0] sm:$0xf0]  ;;  %vm3395_vm7 = vcmask 744448  }
 0x15f   : > { %986 = vst [vmem:[#allocation3 + $0x1e8] sm:$0xff] %v979_v2  ;;  %v2123_v51 = vor.u32 %v2364_v11, %v2122_v16  ;;  %v2127_v17 = vor.u32 %v2361_v14, %v2124_v48 }
 0x160   : > { %v508_v21 = vpop.permute.xlu2 %507  ;;  %v3213_v60 = vpop.permute.xlu1 %538 }
 0x161   : > { %v512_v58 = vrot.slane %v508_v21, 4  ;;  %v506_v31 = vpop.permute.xlu0 %505  ;;  %1761 = vmatpush.bf16.msrb.mxu1 %v2123_v51  ;;  %1787 = vmatpush.bf16.msrb.mxu0 %v2127_v17  ;;  %v544_v30 = vrot.slane %v3213_v60, 4 }
 0x162   : > { %v511_v1 = vrot.slane %v506_v31, 4 }
 0x164   : > { %v516_v45 = vsel %vm347_vm0, %v510_v39, %v511_v1  ;;  %v518_v59 = vsel %vm347_vm0, %v511_v1, %v512_v58  ;;  %v2400_v39 = vld [vmem:[#allocation3 + $0x1fc] sm:$0xf0] }
 0x165   : > { %v517_v35 = vsel %vm3393_vm8, %v2942_v38, %v516_v45  ;;  %v519_v47 = vsel %vm3394_vm9, %v506_v31, %v518_v59  ;;  %v549_v38 = vsel %vm347_vm0, %v543_v61, %v544_v30  ;;  %v2352_v1 = vld [vmem:[#allocation3 + $0x7c] sm:$0xf0]  ;;  %v2076_v45 = vld [vmem:[#allocation3 + $0x80] sm:$0xf0] }
 0x166   : > { %524 = vst [vmem:[#allocation3 + $0x98] sm:$0xff] %v517_v35  ;;  %v550_v36 = vsel %vm3395_vm7, %v2956_v53, %v549_v38  ;;  %v2266_v32 = vld [vmem:[#allocation3 + $0x1e8] sm:$0xf]  ;;  %v2397_v56 = vld [vmem:[#allocation3 + $0x1ec] sm:$0xf] }
 0x167   : > { %525 = vst [vmem:[#allocation3 + $0xa0] sm:$0xff] %v519_v47  ;;  %v2267_v57 = vor.u32 %v2400_v39, %v2266_v32  ;;  %v2271_v52 = vor.u32 %v2397_v56, %v2268_v37  ;;  %v2074_v47 = vld [vmem:[#allocation3 + $0x68] sm:$0xf]  ;;  %v2349_v38 = vld [vmem:[#allocation3 + $0x6c] sm:$0xf] }
 0x168   : > { %v1135_v43 = vpop.permute.xlu2 %1134  ;;  %557 = vst [vmem:[#allocation3 + $0xb0] sm:$0xff] %v550_v36  ;;  %v3244_v5 = vpop.permute.xlu1 %901  ;;  %v2079_v37 = vor.u32 %v2349_v38, %v2076_v45  ;;  %v2346_v36 = vld [vmem:[#allocation3 + $0x4c] sm:$0xf0]  ;;  %v2052_v32 = vld [vmem:[#allocation3 + $0x50] sm:$0xf0] }
 0x169   : > { %v1139_v40 = vrot.slane %v1135_v43, 4  ;;  %v673_v62 = vpop.permute.xlu0 %672  ;;  %1776 = vmatpush.bf16.msrb.mxu3 %v2267_v57  ;;  %1802 = vmatpush.bf16.msrb.mxu2 %v2271_v52  ;;  %v907_v14 = vrot.slane %v3244_v5, 4  ;;  %v2050_v43 = vld [vmem:[#allocation3 + $0x38] sm:$0xf]  ;;  %v2244_v56 = vld [vmem:[#allocation3 + $0x1d0] sm:$0xf0] }
 0x16a   : > { %v677_v61 = vrot.slane %v673_v62, 4 }
 0x16b   : > { %v1145_v24 = vsel %vm347_vm0, %v1138_v26, %v1139_v40 }
 0x16c   : > { %v1146_v8 = vsel %vm1141_vm1, %v3079_v44, %v1145_v24  ;;  %v683_v53 = vsel %vm347_vm0, %v676_v15, %v677_v61  ;;  %v912_v44 = vsel %vm347_vm0, %v906_v34, %v907_v14  ;;  %v2051_v24 = vor.u32 %v2346_v36, %v2050_v43 }
 0x16d   : > { %1152 = vst [vmem:[#allocation3 + $0x268] sm:$0xff] %v1146_v8  ;;  %v684_v16 = vsel %vm679_vm12, %v3121_v13, %v683_v53  ;;  %v2098_v49 = vld [vmem:[#allocation3 + $0x98] sm:$0xf]  ;;  %v2355_v26 = vld [vmem:[#allocation3 + $0x9c] sm:$0xf]  ;;  %v913_v15 = vsel %vm910_vm2, %v3036_v27, %v912_v44  ;;  %vm3396_vm12 = vcmask 965632  }
 0x16e   : > { %690 = vst [vmem:[#allocation3 + $0x118] sm:$0xff] %v684_v16  ;;  %v2343_v53 = vld [vmem:[#allocation3 + $0x3c] sm:$0xf]  ;;  %v2026_v44 = vld [vmem:[#allocation3 + $0x8] sm:$0xf] }
 0x16f   : > { %v2358_v2 = vld [vmem:[#allocation3 + $0xac] sm:$0xf0]  ;;  %v2100_v11 = vld [vmem:[#allocation3 + $0xb0] sm:$0xf0]  ;;  %920 = vst [vmem:[#allocation3 + $0x1b8] sm:$0xff] %v913_v15 }
 0x170   : > { %v970_v21 = vpop.permute.xlu2 %969  ;;  %v2099_v13 = vor.u32 %v2358_v2, %v2098_v49  ;;  %v2103_v31 = vor.u32 %v2355_v26, %v2100_v11  ;;  %v607_v59 = vpop.permute.xlu1 %606  ;;  %v2055_v49 = vor.u32 %v2343_v53, %v2052_v32  ;;  %v2337_v2 = vld [vmem:[#allocation3 + $0xc] sm:$0xf]  ;;  %v2028_v11 = vld [vmem:[#allocation3 + $0x20] sm:$0xf0]  ;;  %v2374_v53 = vld [vmem:[#allocation3 + $0x134] sm:$0xf] }
 0x171   : > { %v974_v48 = vrot.slane %v970_v21, 4  ;;  %v574_v58 = vpop.permute.xlu0 %573  ;;  %v611_v39 = vrot.slane %v607_v59, 4  ;;  %v2340_v21 = vld [vmem:[#allocation3 + $0x1c] sm:$0xf0]  ;;  %v2383_v59 = vld [vmem:[#allocation3 + $0x174] sm:$0xf0] }
 0x172   : > { %v578_v51 = vrot.slane %v574_v58, 4  ;;  %1762 = vmatpush.bf16.msrb.mxu1 %v2099_v13  ;;  %1788 = vmatpush.bf16.msrb.mxu0 %v2103_v31  ;;  %v2027_v13 = vor.u32 %v2340_v21, %v2026_v44  ;;  %v2031_v31 = vor.u32 %v2337_v2, %v2028_v11  ;;  %v2368_v2 = vld [vmem:[#allocation3 + $0x104] sm:$0xf] }
 0x173   : > { %v980_v17 = vsel %vm347_vm0, %v973_v20, %v974_v48  ;;  %v2075_v20 = vor.u32 %v2352_v1, %v2074_v47 }
 0x174   : > { %v981_v34 = vsel %vm3396_vm12, %v3197_v50, %v980_v17  ;;  %v584_v27 = vsel %vm347_vm0, %v577_v6, %v578_v51  ;;  %v617_v50 = vsel %vm347_vm0, %v610_v46, %v611_v39  ;;  %v2394_v6 = vld [vmem:[#allocation3 + $0x1cc] sm:$0xf0]  ;;  %v2413_v11 = vld [vmem:[#allocation3 + $0x264] sm:$0xf0] }
 0x175   : > { %987 = vst [vmem:[#allocation3 + $0x1f0] sm:$0xff] %v981_v34  ;;  %v585_v35 = vsel %vm580_vm13, %v3154_v55, %v584_v27  ;;  %v618_v55 = vsel %vm613_vm14, %v3169_v0, %v617_v50  ;;  %v2218_v34 = vld [vmem:[#allocation3 + $0x188] sm:$0xf]  ;;  %v2202_v27 = vld [vmem:[#allocation3 + $0x160] sm:$0xf]  ;;  %vm3398_vm13 = vmmov %vm3395_vm7  ;;  %vm3399_vm14 = vcmask 818176  }
 0x176   : > { %591 = vst [vmem:[#allocation3 + $0xd0] sm:$0xff] %v585_v35  ;;  %1763 = vmatpush.bf16.msrb.mxu1 %v2075_v20  ;;  %1789 = vmatpush.bf16.msrb.mxu0 %v2079_v37  ;;  %v2242_v62 = vld [vmem:[#allocation3 + $0x1b8] sm:$0xf]  ;;  %v2391_v57 = vld [vmem:[#allocation3 + $0x1bc] sm:$0xf]  ;;  %v2203_v32 = vor.u32 %v2383_v59, %v2202_v27 }
 0x177   : > { %624 = vst [vmem:[#allocation3 + $0xe8] sm:$0xff] %v618_v55  ;;  %v2243_v8 = vor.u32 %v2394_v6, %v2242_v62  ;;  %v2247_v16 = vor.u32 %v2391_v57, %v2244_v56  ;;  %v2204_v35 = vld [vmem:[#allocation3 + $0x178] sm:$0xf0]  ;;  %v2385_v20 = vld [vmem:[#allocation3 + $0x18c] sm:$0xf] }
 0x178   : > { %v937_v40 = vpop.permute.xlu2 %936  ;;  %v1168_v48 = vpop.permute.xlu1 %1167  ;;  %v2180_v62 = vld [vmem:[#allocation3 + $0x148] sm:$0xf0] }
 0x179   : > { %v941_v52 = vrot.slane %v937_v40, 4  ;;  %v3271_v61 = vpop.permute.xlu0 %868  ;;  %1777 = vmatpush.bf16.msrb.mxu3 %v2243_v8  ;;  %1803 = vmatpush.bf16.msrb.mxu2 %v2247_v16  ;;  %v1172_v58 = vrot.slane %v1168_v48, 4  ;;  %v2178_v8 = vld [vmem:[#allocation3 + $0x130] sm:$0xf] }
 0x17a   : > { %v874_v46 = vrot.slane %v3271_v61, 4  ;;  %1764 = vmatpush.bf16.msrb.mxu1 %v2051_v24  ;;  %1790 = vmatpush.bf16.msrb.mxu0 %v2055_v49  ;;  %v2183_v49 = vor.u32 %v2374_v53, %v2180_v62 }
 0x17b   : > { %v947_v26 = vsel %vm347_vm0, %v940_v22, %v941_v52 }
 0x17c   : > { %v948_v0 = vsel %vm943_vm10, %v3149_v54, %v947_v26  ;;  %v879_v15 = vsel %vm347_vm0, %v873_v9, %v874_v46  ;;  %v1178_v54 = vsel %vm347_vm0, %v1171_v7, %v1172_v58  ;;  %vm3397_vm10 = vcmask 670720   ;;  %v2156_v26 = vld [vmem:[#allocation3 + $0x118] sm:$0xf0] }
 0x17d   : > { %954 = vst [vmem:[#allocation3 + $0x1d8] sm:$0xff] %v948_v0  ;;  %v880_v22 = vsel %vm877_vm5, %v3031_v23, %v879_v15  ;;  %v1179_v9 = vsel %vm3397_vm10, %v2907_v4, %v1178_v54  ;;  %v2154_v15 = vld [vmem:[#allocation3 + $0x100] sm:$0xf]  ;;  %v2130_v58 = vld [vmem:[#allocation3 + $0xd0] sm:$0xf] }
 0x17e   : > { %887 = vst [vmem:[#allocation3 + $0x1a0] sm:$0xff] %v880_v22  ;;  %1765 = vmatpush.bf16.msrb.mxu1 %v2027_v13  ;;  %1791 = vmatpush.bf16.msrb.mxu0 %v2031_v31  ;;  %v1520_v1 = vunpack.c.l.b16 %v1179_v9  ;;  %v1521_v45 = vunpack.c.h.b16 %v1179_v9  ;;  %v2159_v22 = vor.u32 %v2368_v2, %v2156_v26  ;;  %v2365_v31 = vld [vmem:[#allocation3 + $0xe4] sm:$0xf0]  ;;  %v2132_v54 = vld [vmem:[#allocation3 + $0xe8] sm:$0xf0]  ;;  %v2551_v9 = vmov 0  }
 0x17f   : > { %2483 = vset.pattern.permute.xlu2 %v2551_v9  ;;  %2484 = vset.pattern.permute.xlu0 %v2551_v9 }
 0x180   : > { %v1604_v7 = vpack.c.b16 %v1520_v1, %v1520_v1  ;;  %v1605_v47 = vpack.c.b16 %v1521_v45, %v1521_v45  ;;  %v1102_v4 = vpop.permute.xlu1 %1101  ;;  %v2324_v45 = vld [vmem:[#allocation3 + $0x268] sm:$0xf0] }
 0x181   : > { %v541_v51 = vpop.permute.xlu0 %540  ;;  %1766 = vmatmul.bf16.vlgmr.msrb.gmra.mxu1 %v3219_v18  ;;  %1792 = vmatmul.bf16.vlgmr.msrb.gmra.mxu0 %v3219_v18  ;;  %v1106_v43 = vrot.slane %v1102_v4, 4 }
 0x182   : > { %v545_v17 = vrot.slane %v541_v51, 4  ;;  %v1701_v6 = vsel %vm347_vm0, %v1604_v7, 0  ;;  %v1704_v40 = vsel %vm347_vm0, %v1605_v47, 0 }
 0x183   : > { %1825 = vmatpush.bf16.msra.mxu1 %v1701_v6  ;;  %v1112_v55 = vsel %vm347_vm0, %v1105_v29, %v1106_v43  ;;  %1851 = vmatpush.bf16.msra.mxu0 %v1704_v40  ;;  %v2371_v29 = vld [vmem:[#allocation3 + $0x114] sm:$0xf0]  ;;  %v2353_v6 = vld [vmem:[#allocation3 + $0x84] sm:$0xf0] }
 0x184   : > { %v551_v23 = vsel %vm347_vm0, %v544_v30, %v545_v17  ;;  %v2380_v30 = vld [vmem:[#allocation3 + $0x164] sm:$0xf]  ;;  %v1113_v57 = vsel %vm1108_vm15, %v3064_v28, %v1112_v55  ;;  %v2155_v48 = vor.u32 %v2371_v29, %v2154_v15 }
 0x185   : > { %v552_v38 = vsel %vm3398_vm13, %v3213_v60, %v551_v23  ;;  %v2388_v39 = vld [vmem:[#allocation3 + $0x19c] sm:$0xf0]  ;;  %v2220_v37 = vld [vmem:[#allocation3 + $0x1a0] sm:$0xf0]  ;;  %v2207_v56 = vor.u32 %v2380_v30, %v2204_v35  ;;  %v2377_v60 = vld [vmem:[#allocation3 + $0x144] sm:$0xf0] }
 0x186   : > { %558 = vst [vmem:[#allocation3 + $0xb8] sm:$0xff] %v552_v38  ;;  %v2219_v36 = vor.u32 %v2388_v39, %v2218_v34  ;;  %v2223_v50 = vor.u32 %v2385_v20, %v2220_v37  ;;  %v2179_v16 = vor.u32 %v2377_v60, %v2178_v8  ;;  %v2106_v20 = vld [vmem:[#allocation3 + $0xa0] sm:$0xf]  ;;  %v2356_v37 = vld [vmem:[#allocation3 + $0xa4] sm:$0xf] }
 0x187   : > { %1119 = vst [vmem:[#allocation3 + $0x250] sm:$0xff] %v1113_v57 }
 0x188   : > { %1778 = vmatpush.bf16.msrb.mxu3 %v2219_v36  ;;  %1804 = vmatpush.bf16.msrb.mxu2 %v2223_v50  ;;  %v1069_v44 = vpop.permute.xlu1 %1068 }
 0x189   : > { %v1036_v52 = vpop.permute.xlu0 %1035  ;;  %v1073_v0 = vrot.slane %v1069_v44, 4  ;;  %v2398_v44 = vld [vmem:[#allocation3 + $0x1f4] sm:$0xf] }
 0x18a   : > { %v1040_v24 = vrot.slane %v1036_v52, 4  ;;  %v2082_v52 = vld [vmem:[#allocation3 + $0x70] sm:$0xf] }
 0x18b   : > { %2331 = vmatmul.msk.bf16.vlgmr.msrb.gmra.mxu2 %vm1684_vm11, %v3222_v3  ;;  %2330 = vmatmul.msk.bf16.vlgmr.msrb.gmra.mxu3 %vm1684_vm11, %v3222_v3  ;;  %v1079_v13 = vsel %vm347_vm0, %v1072_v10, %v1073_v0  ;;  %v2131_v10 = vor.u32 %v2365_v31, %v2130_v58  ;;  %v2083_v8 = vor.u32 %v2353_v6, %v2082_v52  ;;  %v2034_v58 = vld [vmem:[#allocation3 + $0x10] sm:$0xf]  ;;  %v2341_v31 = vld [vmem:[#allocation3 + $0x24] sm:$0xf0] }
 0x18c   : > { %1810 = vmatpush.bf16.msra.mxu3 %v2203_v32  ;;  %1836 = vmatpush.bf16.msra.mxu2 %v2207_v56  ;;  %v1046_v28 = vsel %vm347_vm0, %v1039_v12, %v1040_v24  ;;  %v1268_v12 = vld [vmem:[%s3380_s3] sm:$0xf]  ;;  %v1080_v51 = vsel %vm3399_vm14, %v3059_v25, %v1079_v13  ;;  %v2084_v32 = vld [vmem:[#allocation3 + $0x88] sm:$0xf0]  ;;  %v2350_v24 = vld [vmem:[#allocation3 + $0x74] sm:$0xf] }
 0x18d   : > { %v1047_v21 = vsel %vm1042_vm4, %v3139_v63, %v1046_v28  ;;  %v2362_v63 = vld [vmem:[#allocation3 + $0xd4] sm:$0xf]  ;;  %1086 = vst [vmem:[#allocation3 + $0x238] sm:$0xff] %v1080_v51  ;;  %1271 = vperm.xlu2 %2483, %v1268_v12   ;;  %v2359_v25 = vld [vmem:[#allocation3 + $0xb4] sm:$0xf0]  ;;  %v2087_v53 = vor.u32 %v2350_v24, %v2084_v32 }
 0x18e   : > { %1053 = vst [vmem:[#allocation3 + $0x220] sm:$0xff] %v1047_v21  ;;  %v2322_v17 = vld [vmem:[#allocation3 + $0x250] sm:$0xf]  ;;  %v2410_v1 = vld [vmem:[#allocation3 + $0x254] sm:$0xf]  ;;  %v2135_v35 = vor.u32 %v2362_v63, %v2132_v54  ;;  %v2107_v50 = vor.u32 %v2359_v25, %v2106_v20 }
 0x18f   : > { %v2323_v34 = vor.u32 %v2413_v11, %v2322_v17  ;;  %v2327_v27 = vor.u32 %v2410_v1, %v2324_v45  ;;  %v2108_v47 = vld [vmem:[#allocation3 + $0xb8] sm:$0xf0]  ;;  %v2058_v11 = vld [vmem:[#allocation3 + $0x40] sm:$0xf]  ;;  %v2338_v12 = vld [vmem:[#allocation3 + $0x14] sm:$0xf] }
 0x190   : > { %1811 = vmatpush.bf16.msra.mxu3 %v2179_v16  ;;  %1837 = vmatpush.bf16.msra.mxu2 %v2183_v49  ;;  %v904_v4 = vpop.permute.xlu1 %903  ;;  %v2111_v30 = vor.u32 %v2356_v37, %v2108_v47  ;;  %v2347_v16 = vld [vmem:[#allocation3 + $0x54] sm:$0xf0]  ;;  %v2060_v49 = vld [vmem:[#allocation3 + $0x58] sm:$0xf0]  ;;  %v2036_v63 = vld [vmem:[#allocation3 + $0x28] sm:$0xf0] }
 0x191   : > { %v1003_v23 = vpop.permute.xlu0 %1002  ;;  %1826 = vmatpush.bf16.msra.mxu1 %v2323_v34  ;;  %1852 = vmatpush.bf16.msra.mxu0 %v2327_v27  ;;  %v908_v39 = vrot.slane %v904_v4, 4  ;;  %v2252_v17 = vld [vmem:[#allocation3 + $0x1d8] sm:$0xf0]  ;;  %v2039_v34 = vor.u32 %v2338_v12, %v2036_v63 }
 0x192   : > { %v1007_v59 = vrot.slane %v1003_v23, 4  ;;  %v2035_v23 = vor.u32 %v2341_v31, %v2034_v58 }
 0x194   : > { %1812 = vmatpush.bf16.msra.mxu3 %v2155_v48  ;;  %1838 = vmatpush.bf16.msra.mxu2 %v2159_v22  ;;  %v1013_v7 = vsel %vm347_vm0, %v1006_v33, %v1007_v59  ;;  %v914_v33 = vsel %vm347_vm0, %v907_v14, %v908_v39  ;;  %v2300_v40 = vld [vmem:[#allocation3 + $0x238] sm:$0xf0]  ;;  %v2344_v48 = vld [vmem:[#allocation3 + $0x44] sm:$0xf]  ;;  %v2059_v22 = vor.u32 %v2347_v16, %v2058_v11 }
 0x195   : > { %v1014_v38 = vsel %vm1009_vm3, %v3106_v42, %v1013_v7  ;;  %v2298_v43 = vld [vmem:[#allocation3 + $0x220] sm:$0xf]  ;;  %v2404_v36 = vld [vmem:[#allocation3 + $0x224] sm:$0xf]  ;;  %v915_v56 = vsel %vm910_vm2, %v3244_v5, %v914_v33  ;;  %v2407_v42 = vld [vmem:[#allocation3 + $0x234] sm:$0xf0] }
 0x196   : > { %1020 = vst [vmem:[#allocation3 + $0x208] sm:$0xff] %v1014_v38  ;;  %v2299_v60 = vor.u32 %v2407_v42, %v2298_v43  ;;  %v2303_v62 = vor.u32 %v2404_v36, %v2300_v40  ;;  %v2274_v5 = vld [vmem:[#allocation3 + $0x1f0] sm:$0xf]  ;;  %v1869_v43 = vstv %s1862_s8 }
 0x197   : > { %921 = vst [vmem:[#allocation3 + $0x1c0] sm:$0xff] %v915_v56 }
 0x198   : > { %1813 = vmatpush.bf16.msra.mxu3 %v2131_v10  ;;  %1839 = vmatpush.bf16.msra.mxu2 %v2135_v35  ;;  %v871_v28 = vpop.permute.xlu1 %870 }
 0x199   : > { %v838_v55 = vpop.permute.xlu0 %837  ;;  %1827 = vmatpush.bf16.msra.mxu1 %v2299_v60  ;;  %1853 = vmatpush.bf16.msra.mxu0 %v2303_v62  ;;  %v875_v0 = vrot.slane %v871_v28, 4 }
 0x19a   : > { %v842_v57 = vrot.slane %v838_v55, 4 }
 0x19b   : > { %v881_v13 = vsel %vm347_vm0, %v874_v46, %v875_v0 }
 0x19c   : > { %1814 = vmatpush.bf16.msra.mxu3 %v2107_v50  ;;  %1840 = vmatpush.bf16.msra.mxu2 %v2111_v30  ;;  %v848_v14 = vsel %vm347_vm0, %v841_v41, %v842_v57  ;;  %v2063_v41 = vor.u32 %v2344_v48, %v2060_v49  ;;  %v882_v54 = vsel %vm877_vm5, %v3271_v61, %v881_v13 }
 0x19d   : > { %v849_v29 = vsel %vm844_vm6, %v3179_v19, %v848_v14  ;;  %v2401_v26 = vld [vmem:[#allocation3 + $0x204] sm:$0xf0]  ;;  %v2276_v21 = vld [vmem:[#allocation3 + $0x208] sm:$0xf0]  ;;  %v2395_v19 = vld [vmem:[#allocation3 + $0x1d4] sm:$0xf0] }
 0x19e   : > { %855 = vst [vmem:[#allocation3 + $0x190] sm:$0xff] %v849_v29  ;;  %v2275_v15 = vor.u32 %v2401_v26, %v2274_v5  ;;  %v2279_v2 = vor.u32 %v2398_v44, %v2276_v21  ;;  %v2250_v9 = vld [vmem:[#allocation3 + $0x1c0] sm:$0xf]  ;;  %v2392_v51 = vld [vmem:[#allocation3 + $0x1c4] sm:$0xf] }
 0x19f   : > { %888 = vst [vmem:[#allocation3 + $0x1a8] sm:$0xff] %v882_v54  ;;  %v2251_v1 = vor.u32 %v2395_v19, %v2250_v9  ;;  %v2255_v45 = vor.u32 %v2392_v51, %v2252_v17 }
 0x1a0   : > { %1815 = vmatpush.bf16.msra.mxu3 %v2083_v8  ;;  %1841 = vmatpush.bf16.msra.mxu2 %v2087_v53 }
 0x1a1   : > { %1828 = vmatpush.bf16.msra.mxu1 %v2275_v15  ;;  %1854 = vmatpush.bf16.msra.mxu0 %v2279_v2 }
 0x1a4   : > { %1816 = vmatpush.bf16.msra.mxu3 %v2059_v22  ;;  %1842 = vmatpush.bf16.msra.mxu2 %v2063_v41 }
 0x1a5   : > { %1829 = vmatpush.bf16.msra.mxu1 %v2251_v1  ;;  %1855 = vmatpush.bf16.msra.mxu0 %v2255_v45  ;;  %v2226_v46 = vld [vmem:[#allocation3 + $0x190] sm:$0xf]  ;;  %v2386_v27 = vld [vmem:[#allocation3 + $0x194] sm:$0xf] }
 0x1a6   : > { %v2389_v61 = vld [vmem:[#allocation3 + $0x1a4] sm:$0xf0]  ;;  %v2228_v59 = vld [vmem:[#allocation3 + $0x1a8] sm:$0xf0] }
 0x1a7   : > { %v2227_v10 = vor.u32 %v2389_v61, %v2226_v46  ;;  %v2231_v35 = vor.u32 %v2386_v27, %v2228_v59 }
 0x1a8   : > { %1817 = vmatpush.bf16.msra.mxu3 %v2035_v23  ;;  %1843 = vmatpush.bf16.msra.mxu2 %v2039_v34 }
 0x1a9   : > { %1830 = vmatpush.bf16.msra.mxu1 %v2227_v10  ;;  %1856 = vmatpush.bf16.msra.mxu0 %v2231_v35 }
 0x1ab   : > { %1818 = vmatmul.bf16.vlgmr.msra.gmra.mxu3 %v3219_v18  ;;  %1844 = vmatmul.bf16.vlgmr.msra.gmra.mxu2 %v3219_v18 }
 0x1ac   : > { %2332 = vmatmul.msk.bf16.vlgmr.msra.gmra.mxu1 %vm1684_vm11, %v3222_v3  ;;  %2333 = vmatmul.msk.bf16.vlgmr.msra.gmra.mxu0 %vm1684_vm11, %v3222_v3 }
 0x1d5   : > { %v1715_v7 = vpop.f32.mrf.mxu0 }
 0x1d7   : > { %v1728_v25 = vpop.f32.mrf.mxu1 }
 0x1db   : > { %v1741_v47 = vpop.f32.mrf.mxu2 }
 0x1dd   : > { %v1754_v18 = vpop.f32.mrf.mxu3  ;;  %v1717_v38 = vpop.f32.mrf.mxu0 }
 0x1df   : > { %v1730_v37 = vpop.f32.mrf.mxu1 }
 0x1e3   : > { %v1743_v33 = vpop.f32.mrf.mxu2 }
 0x1e5   : > { %v1756_v56 = vpop.f32.mrf.mxu3 }
 0x1e7   : > { %v1272_v4 = vpop.permute.xlu2 %1271 }
 0x1e8   : > { %v1716_v39 = vadd.f32 %v1715_v7, %v1272_v4  ;;  %v1742_v20 = vadd.f32 %v1741_v47, %v1272_v4 }
 0x1ea   : > { %v1729_v36 = vadd.f32 %v1728_v25, %v1716_v39  ;;  %v1755_v50 = vadd.f32 %v1754_v18, %v1742_v20 }
 0x1ec   : > { %vm1863_vm15 = vcmp.ge.f32.partialorder %v1729_v36, 0.0  ;;  %vm1864_vm1 = vcmp.ge.f32.partialorder %v1755_v50, 0.0  ;;  %v1870_v3 = vmul.f32 %v1869_v43, %v1729_v36  ;;  %v1871_v30 = vmul.f32 %v1869_v43, %v1755_v50 }
 0x1ee   : > { %v1876_v6 = vsel %vm1863_vm15, %v1729_v36, %v1870_v3  ;;  %v1877_v32 = vsel %vm1864_vm1, %v1755_v50, %v1871_v30 }
 0x1ef   : > { %v1888_v42 = vrot.slane %v1877_v32, 4 }
 0x1f1   : > { %v1891_v40 = vsel %vm347_vm0, %v1876_v6, %v1888_v42 }
 0x1f2   : > { %1897 = vst [vmem:[%s3354_s13] sm:$0xff] %v1891_v40 }
 0x1fe   : > { %v1767_v55 = vpop.f32.mrf.mxu1  ;;  %v1793_v60 = vpop.f32.mrf.mxu0 }
 0x1ff   : > { %v1794_v52 = vadd.f32 %v1793_v60, %v1272_v4  ;;  %v1768_v24 = vadd.f32 %v1767_v55, %v1272_v4 }
 0x206   : > { %v1769_v62 = vpop.f32.mrf.mxu1  ;;  %v1795_v57 = vpop.f32.mrf.mxu0 }
 0x20e   : > { %v1806_v8 = vpop.f32.mrf.mxu2  ;;  %v1780_v53 = vpop.f32.mrf.mxu3 }
 0x20f   : > { %v1807_v14 = vadd.f32 %v1806_v8, %v1794_v52  ;;  %v1781_v5 = vadd.f32 %v1780_v53, %v1768_v24 }
 0x211   : > { %vm1866_vm2 = vcmp.ge.f32.partialorder %v1807_v14, 0.0  ;;  %v1873_v16 = vmul.f32 %v1869_v43, %v1807_v14  ;;  %vm1865_vm3 = vcmp.ge.f32.partialorder %v1781_v5, 0.0  ;;  %v1872_v49 = vmul.f32 %v1869_v43, %v1781_v5 }
 0x213   : > { %v1879_v28 = vsel %vm1866_vm2, %v1807_v14, %v1873_v16  ;;  %v1878_v29 = vsel %vm1865_vm3, %v1781_v5, %v1872_v49 }
 0x214   : > { %v1889_v26 = vrot.slane %v1879_v28, 4 }
 0x216   : > { %v1892_v44 = vsel %vm347_vm0, %v1878_v29, %v1889_v26  ;;  %v1808_v21 = vpop.f32.mrf.mxu2  ;;  %v1782_v0 = vpop.f32.mrf.mxu3 }
 0x217   : > { %1898 = vst [vmem:[%s3354_s13 + $0x8] sm:$0xff] %v1892_v44 }
 0x229   : > { %v1832_v11 = vpop.f32.mrf.mxu1  ;;  %v1858_v48 = vpop.f32.mrf.mxu0 }
 0x22e   : > { %v1819_v15 = vpop.f32.mrf.mxu3  ;;  %v1845_v2 = vpop.f32.mrf.mxu2 }
 0x22f   : > { %v1820_v22 = vadd.f32 %v1819_v15, %v1272_v4  ;;  %v1846_v41 = vadd.f32 %v1845_v2, %v1272_v4 }
 0x231   : > { %v1833_v58 = vadd.f32 %v1832_v11, %v1820_v22  ;;  %v1859_v12 = vadd.f32 %v1858_v48, %v1846_v41  ;;  %v1834_v17 = vpop.f32.mrf.mxu1  ;;  %v1860_v1 = vpop.f32.mrf.mxu0 }
 0x233   : > { %vm1867_vm4 = vcmp.ge.f32.partialorder %v1833_v58, 0.0  ;;  %v1874_v13 = vmul.f32 %v1869_v43, %v1833_v58  ;;  %vm1868_vm5 = vcmp.ge.f32.partialorder %v1859_v12, 0.0  ;;  %v1875_v19 = vmul.f32 %v1869_v43, %v1859_v12 }
 0x235   : > { %v1880_v31 = vsel %vm1867_vm4, %v1833_v58, %v1874_v13  ;;  %v1881_v63 = vsel %vm1868_vm5, %v1859_v12, %v1875_v19 }
 0x236   : > { %v1890_v54 = vrot.slane %v1881_v63, 4  ;;  %v1821_v9 = vpop.f32.mrf.mxu3  ;;  %v1847_v51 = vpop.f32.mrf.mxu2 }
 0x238   : > { %v1893_v45 = vsel %vm347_vm0, %v1880_v31, %v1890_v54 }
 0x239   : > { %1899 = vst [vmem:[%s3354_s13 + $0x10] sm:$0xff] %v1893_v45 }
 0x23a PF: > { %s16_s24 = sadd.s32 1, %s2523_s24   ;;  %s3400_s20 = smov %s2515_s22 }
 0x23b   : > { %p13_p9 = scmp.ge.s32.totalorder %s16_s24, 8   ;;  %s3401_s21 = smov %s2519_s23 }
 0x23c   : > { %s3402_s22 = smov %s3405_s4  ;;  %s3403_s23 = smov %s3409_s25 }
 0x23d   :  { %15 = sbr.rel (!%p13_p9) target bundleno = 3 (0x3), region = 73 }

</bundles_post_ra>
